<compile_context>
chip_gen: v5e
topology: v5e:2x2
jax: 0.10.0
libtpu: 0.0.40
codegen_flags: <defaults>
</compile_context>

<pallas_src>
import math
import jax
import jax.numpy as jnp
from jax.experimental import pallas as pl
from jax.experimental.pallas import tpu as pltpu

# ---------------- small deterministic config ----------------
B, S, H = 4, 8, 32            # batch, seq, hidden
EXB = 2                       # examples per grid block
NBLK = B // EXB               # grid size
TB = EXB * S                  # token rows per block
NUM_HEADS = 2
HEAD_DIM = H // NUM_HEADS
NUM_LAYERS = 2
FFN = 64
VOCAB = 64
MAX_POS = 16
ENTITY_ID = 7                 # stand-in for tokenizer.convert_tokens_to_ids('entity')
LN_EPS = 1e-12
NEG_INF = -1e9
COS_EPS = 1e-8
DCOLS = 128                   # lane-padded data-slab width (H + TB + 2 = 50 used)


# ---------------- static slab layouts (shared by pack_params and the kernel) ----------------
def _wslab_layout():
    rows, r = {}, 0
    for l in range(NUM_LAYERS):
        for h in range(NUM_HEADS):
            for role in ("q", "k", "v"):
                rows[(l, role, h)] = r; r += H          # [H, HEAD_DIM]
        rows[(l, "wo")] = r; r += H                     # [H, H]
        rows[(l, "w1")] = r; r += H                     # [H, FFN]
        rows[(l, "w2")] = r; r += FFN                   # [FFN, H]
    return rows, r


def _pslab_layout():
    rows, r = {}, 0
    rows["emb_g"] = r; r += 1
    rows["emb_b"] = r; r += 1
    for l in range(NUM_LAYERS):
        for h in range(NUM_HEADS):
            for role in ("bq", "bk", "bv"):
                rows[(l, role, h)] = r; r += 1
        for name in ("bo", "ln1_g", "ln1_b", "b1", "b2", "ln2_g", "ln2_b"):
            rows[(l, name)] = r; r += 1
    return rows, r


W_ROWS, W_TOTAL_ROWS = _wslab_layout()                  # 640 rows (multiple of 8)
P_ROWS, P_TOTAL_ROWS = _pslab_layout()                  # 28 rows
P_PAD_ROWS = ((P_TOTAL_ROWS + 7) // 8) * 8              # 32 rows


# ---------------- fused Pallas kernel (one example block per grid step) ----------------
def _encoder_block_kernel(data_ref, wslab_ref, pslab_ref, logits_ref, part_ref):
    gelu_c = math.sqrt(2.0 / math.pi)
    scale = 1.0 / math.sqrt(HEAD_DIM)

    def prow(key, width):                               # [1, width] f32 param row
        r = P_ROWS[key]
        return pslab_ref[r:r + 1, 0:width]

    def wmat(key, rows, cols, row_off=0):               # [rows, cols] bf16 weight tile
        r = W_ROWS[key] + row_off
        return wslab_ref[r:r + rows, 0:cols]

    def mm(a, w):                                       # bf16 x bf16 MXU matmul, f32 accumulate
        return jnp.dot(a.astype(jnp.bfloat16), w, preferred_element_type=jnp.float32)

    def layer_norm(v, gkey, bkey):
        mean = jnp.mean(v, axis=-1, keepdims=True)
        c = v - mean
        var = jnp.mean(c * c, axis=-1, keepdims=True)
        return c * jax.lax.rsqrt(var + LN_EPS) * prow(gkey, H) + prow(bkey, H)

    # ---- per-block data: one DMA'd slab, static lane slices ----
    x    = data_ref[0, :, 0:H]                          # [TB, H] summed embeddings
    bias = data_ref[0, :, H:H + TB]                     # [TB, TB] additive attention mask
    em   = data_ref[0, :, H + TB:H + TB + 1]            # [TB, 1] entity mask (pos 0 excluded)
    tm   = data_ref[0, :, H + TB + 1:H + TB + 2]        # [TB, 1] non-pad mask (label != 0)

    x = layer_norm(x, "emb_g", "emb_b")                 # f32 residual stream [TB, H]

    for l in range(NUM_LAYERS):                         # static unroll, L = 2
        # ---- self-attention: per-head QKV matmuls on aligned weight slices,
        #      Wo folded per head (vreg-resident accumulation, no ctx scratch) ----
        attn = jnp.zeros((TB, H), jnp.float32)
        for h in range(NUM_HEADS):
            q = mm(x, wmat((l, "q", h), H, HEAD_DIM)) + prow((l, "bq", h), HEAD_DIM)
            k = mm(x, wmat((l, "k", h), H, HEAD_DIM)) + prow((l, "bk", h), HEAD_DIM)
            v = mm(x, wmat((l, "v", h), H, HEAD_DIM)) + prow((l, "bv", h), HEAD_DIM)
            s = jax.lax.dot_general(q.astype(jnp.bfloat16), k.astype(jnp.bfloat16),
                                    (((1,), (1,)), ((), ())),
                                    preferred_element_type=jnp.float32)      # [TB, TB]
            s = s * scale + bias
            p = jnp.exp(s - jnp.max(s, axis=-1, keepdims=True))
            p = p * pl.reciprocal(jnp.sum(p, axis=-1, keepdims=True), approx=True)
            ctx = jnp.dot(p.astype(jnp.bfloat16), v.astype(jnp.bfloat16),
                          preferred_element_type=jnp.float32)                # [TB, hd]
            attn = attn + mm(ctx, wmat((l, "wo"), HEAD_DIM, H, row_off=h * HEAD_DIM))
        attn = attn + prow((l, "bo"), H)
        x = layer_norm(x + attn, (l, "ln1_g"), (l, "ln1_b"))

        # ---- feed-forward (tanh-approximate GELU, as in BERT) ----
        hmid = mm(x, wmat((l, "w1"), H, FFN)) + prow((l, "b1"), FFN)
        hmid = 0.5 * hmid * (1.0 + jnp.tanh(gelu_c * (hmid + 0.044715 * hmid * hmid * hmid)))
        ffn = mm(hmid, wmat((l, "w2"), FFN, H)) + prow((l, "b2"), H)
        x = layer_norm(x + ffn, (l, "ln2_g"), (l, "ln2_b"))

    logits_ref[0] = x                                   # one writeback per block

    # ---- per-block partial reductions for get_proto() + CLLoss() ----
    ent_cnt = jnp.sum(em)                               # number of entity tokens in block
    tok_cnt = jnp.sum(tm)                               # number of non-pad tokens in block
    ent_sum = jnp.sum(x * em, axis=0, keepdims=True)    # [1, H] sum of entity vectors
    inv_norm = jax.lax.rsqrt(jnp.maximum(jnp.sum(x * x, axis=-1, keepdims=True),
                                         COS_EPS * COS_EPS))   # 1 / max(|x_t|, eps)
    unit_sum = jnp.sum(x * inv_norm * tm, axis=0, keepdims=True)   # [1, H]
    part_ref[0, 0:1, :] = ent_sum
    part_ref[0, 1:2, :] = unit_sum
    part_ref[0, 2:3, :] = jnp.zeros((1, H), jnp.float32) + ent_cnt
    part_ref[0, 3:4, :] = jnp.zeros((1, H), jnp.float32) + tok_cnt


def fused_forward(wslab, pslab, data):
    nblk = data.shape[0]
    return pl.pallas_call(
        _encoder_block_kernel,
        out_shape=(jax.ShapeDtypeStruct((nblk, TB, H), jnp.float32),
                   jax.ShapeDtypeStruct((nblk, 4, H), jnp.float32)),
        grid=(nblk,),
        in_specs=[pl.BlockSpec((1, TB, DCOLS), lambda i: (i, 0, 0)),          # per-block data
                  pl.BlockSpec((W_TOTAL_ROWS, 128), lambda i: (0, 0)),        # weights (resident)
                  pl.BlockSpec((P_PAD_ROWS, 128), lambda i: (0, 0))],         # LN/bias (resident)
        out_specs=(pl.BlockSpec((1, TB, H), lambda i: (i, 0, 0)),
                   pl.BlockSpec((1, 4, H), lambda i: (i, 0, 0))),
        compiler_params=pltpu.CompilerParams(dimension_semantics=("parallel",)),
    )(data, wslab, pslab)


# ---------------- deterministic parameter init (no checkpoints) ----------------
def init_params(key):
    keys = jax.random.split(key, 64)
    kit = iter(keys)

    def nrm(shape):
        return 0.02 * jax.random.normal(next(kit), shape, dtype=jnp.float32)

    params = {
        "word_emb": nrm((VOCAB, H)),
        "pos_emb": nrm((MAX_POS, H)),
        "type_emb": nrm((2, H)),
        "emb_ln_g": jnp.ones((H,), jnp.float32),
        "emb_ln_b": jnp.zeros((H,), jnp.float32),
        "layers": [],
    }
    for _ in range(NUM_LAYERS):
        params["layers"].append({
            "wq": nrm((H, H)), "bq": jnp.zeros((H,), jnp.float32),
            "wk": nrm((H, H)), "bk": jnp.zeros((H,), jnp.float32),
            "wv": nrm((H, H)), "bv": jnp.zeros((H,), jnp.float32),
            "wo": nrm((H, H)), "bo": jnp.zeros((H,), jnp.float32),
            "ln1_g": jnp.ones((H,), jnp.float32), "ln1_b": jnp.zeros((H,), jnp.float32),
            "w1": nrm((H, FFN)), "b1": jnp.zeros((FFN,), jnp.float32),
            "w2": nrm((FFN, H)), "b2": jnp.zeros((H,), jnp.float32),
            "ln2_g": jnp.ones((H,), jnp.float32), "ln2_b": jnp.zeros((H,), jnp.float32),
        })
    return params


def pack_params(params):
    """Pack everything into two lane-padded slabs: bf16 weights, f32 LN/bias rows."""
    wslab = jnp.zeros((W_TOTAL_ROWS, 128), jnp.float32)
    pslab = jnp.zeros((P_PAD_ROWS, 128), jnp.float32)

    def put_w(slab, key, mat):
        r = W_ROWS[key]
        rows, cols = mat.shape
        return slab.at[r:r + rows, 0:cols].set(mat)

    def put_p(slab, key, vec):
        r = P_ROWS[key]
        return slab.at[r, 0:vec.shape[0]].set(vec)

    pslab = put_p(pslab, "emb_g", params["emb_ln_g"])
    pslab = put_p(pslab, "emb_b", params["emb_ln_b"])
    for l, lp in enumerate(params["layers"]):
        for h in range(NUM_HEADS):
            sl = slice(h * HEAD_DIM, (h + 1) * HEAD_DIM)
            wslab = put_w(wslab, (l, "q", h), lp["wq"][:, sl])
            wslab = put_w(wslab, (l, "k", h), lp["wk"][:, sl])
            wslab = put_w(wslab, (l, "v", h), lp["wv"][:, sl])
            pslab = put_p(pslab, (l, "bq", h), lp["bq"][sl])
            pslab = put_p(pslab, (l, "bk", h), lp["bk"][sl])
            pslab = put_p(pslab, (l, "bv", h), lp["bv"][sl])
        wslab = put_w(wslab, (l, "wo"), lp["wo"])
        wslab = put_w(wslab, (l, "w1"), lp["w1"])
        wslab = put_w(wslab, (l, "w2"), lp["w2"])
        pslab = put_p(pslab, (l, "bo"), lp["bo"])
        pslab = put_p(pslab, (l, "ln1_g"), lp["ln1_g"])
        pslab = put_p(pslab, (l, "ln1_b"), lp["ln1_b"])
        pslab = put_p(pslab, (l, "b1"), lp["b1"])
        pslab = put_p(pslab, (l, "b2"), lp["b2"])
        pslab = put_p(pslab, (l, "ln2_g"), lp["ln2_g"])
        pslab = put_p(pslab, (l, "ln2_b"), lp["ln2_b"])
    return {"wslab": wslab.astype(jnp.bfloat16), "pslab": pslab}


# ---------------- forward (embedding gather, slab packing & tiny final combine stay in XLA) ----
def forward(params, packed, x, labels=None):
    input_ids = x["input_ids"]                           # [B, S]
    attention_mask = x["attention_mask"]                 # [B, S]
    B_, S_ = input_ids.shape
    assert B_ % EXB == 0 and S_ == S

    # Embedding lookup (gather has no clean Pallas path at this size; stays in glue).
    tok = jnp.take(params["word_emb"], input_ids, axis=0)            # [B, S, H]
    pos = params["pos_emb"][:S_][None, :, :]
    typ = params["type_emb"][0][None, None, :]
    x_emb = (tok + pos + typ).astype(jnp.float32)

    lbl = labels if labels is not None else jnp.zeros((B_, S_), jnp.int32)
    pos_ids = jnp.arange(S_, dtype=jnp.int32)[None, :]
    label_mask = jnp.logical_and(lbl == ENTITY_ID, pos_ids != 0)      # entity tokens, pos 0 removed
    non_label_mask = jnp.logical_and(lbl != 0, jnp.logical_not(label_mask))

    # Pack all per-example-block data (embeddings | additive attention bias | masks) into
    # ONE lane-padded slab per block => a single input DMA per grid step.
    nblk = B_ // EXB
    x_blk = x_emb.reshape(nblk, TB, H)
    am_blk = attention_mask.reshape(nblk, TB)
    seg = jnp.arange(TB, dtype=jnp.int32) // S_                       # block-diagonal per example
    same = seg[:, None] == seg[None, :]
    bias_blk = jnp.where(jnp.logical_and(same[None, :, :], (am_blk > 0)[:, None, :]),
                         0.0, NEG_INF).astype(jnp.float32)            # [nblk, TB, TB]
    em_blk = label_mask.reshape(nblk, TB, 1).astype(jnp.float32)
    tm_blk = (lbl != 0).reshape(nblk, TB, 1).astype(jnp.float32)
    data = jnp.concatenate([x_blk, bias_blk, em_blk, tm_blk], axis=-1)
    data = jnp.pad(data, ((0, 0), (0, 0), (0, DCOLS - data.shape[-1])))

    logits_blk, part = fused_forward(packed["wslab"], packed["pslab"], data)
    logits = logits_blk.reshape(B_, S_, H)
    if labels is None:
        return logits

    # Final proto / loss combine across blocks (tiny O(B*H) glue, keeps the grid 'parallel').
    ent_sum = jnp.sum(part[:, 0, :], axis=0)             # [H]
    unit_sum = jnp.sum(part[:, 1, :], axis=0)            # [H]
    ent_cnt = jnp.sum(part[:, 2, 0])
    tok_cnt = jnp.sum(part[:, 3, 0])
    # Guards: the PyTorch reference would NaN for zero-entity / all-pad batches.
    proto = ent_sum / jnp.maximum(ent_cnt, 1.0)
    proto_unit = proto * jax.lax.rsqrt(jnp.maximum(jnp.sum(proto * proto), COS_EPS * COS_EPS))
    loss = jnp.dot(proto_unit, unit_sum) / jnp.maximum(tok_cnt, 1.0)
    # TODO(synk): PyTorch returns ragged python lists label_tensor / non_label_tensor;
    # with static shapes we return boolean masks over [B, S] carrying the same selection.
    return logits, loss, label_mask, non_label_mask


if __name__ == "__main__":
    key = jax.random.PRNGKey(0)
    pkey, ikey = jax.random.split(key)
    params = init_params(pkey)
    packed = pack_params(params)

    input_ids = jax.random.randint(ikey, (B, S), 1, VOCAB, dtype=jnp.int32)
    attention_mask = jnp.array([[1, 1, 1, 1, 1, 1, 1, 1],
                                [1, 1, 1, 1, 1, 0, 0, 0],
                                [1, 1, 1, 1, 1, 1, 0, 0],
                                [1, 1, 1, 0, 0, 0, 0, 0]], dtype=jnp.int32)
    labels = jnp.array([[ENTITY_ID, 3, ENTITY_ID, 5, ENTITY_ID, 2, 0, 0],
                        [ENTITY_ID, ENTITY_ID, 4, 0, 0, 0, 0, 0],
                        [ENTITY_ID, 2, 3, ENTITY_ID, 1, 0, 0, 0],
                        [ENTITY_ID, 5, 0, 0, 0, 0, 0, 0]], dtype=jnp.int32)

    logits, loss, label_mask, non_label_mask = forward(
        params, packed, {"input_ids": input_ids, "attention_mask": attention_mask}, labels)
    jax.block_until_ready((logits, loss, label_mask, non_label_mask))
    assert logits.shape == (B, S, H)
    assert loss.shape == ()
    print("KERNEL_OK")
</pallas_src>

<mosaic_0001>
module attributes {stable_mosaic.version = 11 : i64} {
  func.func @_encoder_block_kernel(%arg0: i32, %arg1: memref<1x16x128xf32, #tpu.memory_space<vmem>>, %arg2: memref<640x128xbf16, #tpu.memory_space<vmem>>, %arg3: memref<32x128xf32, #tpu.memory_space<vmem>>, %arg4: memref<1x16x32xf32, #tpu.memory_space<vmem>>, %arg5: memref<1x4x32xf32, #tpu.memory_space<vmem>>) attributes {dimension_semantics = [#tpu.dimension_semantics<parallel>], iteration_bounds = array<i64: 2>, scalar_prefetch = 0 : i64, scratch_operands = 0 : i64, tpu.core_type = #tpu.core_type<tc>, window_params = [{transform_indices = @transform_0, window_bounds = array<i64: 1, 16, 128>}, {pipeline_mode = #tpu.pipeline_mode<synchronous>, transform_indices = @transform_1, window_bounds = array<i64: 640, 128>}, {pipeline_mode = #tpu.pipeline_mode<synchronous>, transform_indices = @transform_2, window_bounds = array<i64: 32, 128>}, {transform_indices = @transform_3, window_bounds = array<i64: 1, 16, 32>}, {transform_indices = @transform_4, window_bounds = array<i64: 1, 4, 32>}]} {
    %c0 = arith.constant 0 : index
    %c0_0 = arith.constant 0 : index
    %c0_1 = arith.constant 0 : index
    %0 = vector.load %arg1[%c0, %c0_0, %c0_1] : memref<1x16x128xf32, #tpu.memory_space<vmem>>, vector<1x16x32xf32>
    %1 = vector.shape_cast %0 : vector<1x16x32xf32> to vector<16x32xf32>
    %c0_2 = arith.constant 0 : index
    %c0_3 = arith.constant 0 : index
    %c32 = arith.constant 32 : index
    %2 = vector.load %arg1[%c0_2, %c0_3, %c32] : memref<1x16x128xf32, #tpu.memory_space<vmem>>, vector<1x16x16xf32>
    %3 = vector.shape_cast %2 : vector<1x16x16xf32> to vector<16x16xf32>
    %c0_4 = arith.constant 0 : index
    %c0_5 = arith.constant 0 : index
    %c48 = arith.constant 48 : index
    %4 = vector.load %arg1[%c0_4, %c0_5, %c48] : memref<1x16x128xf32, #tpu.memory_space<vmem>>, vector<1x16x1xf32>
    %5 = vector.shape_cast %4 : vector<1x16x1xf32> to vector<16x1xf32>
    %c0_6 = arith.constant 0 : index
    %c0_7 = arith.constant 0 : index
    %c49 = arith.constant 49 : index
    %6 = vector.load %arg1[%c0_6, %c0_7, %c49] : memref<1x16x128xf32, #tpu.memory_space<vmem>>, vector<1x16x1xf32>
    %7 = vector.shape_cast %6 : vector<1x16x1xf32> to vector<16x1xf32>
    %cst = arith.constant dense<0.000000e+00> : vector<16xf32>
    %8 = vector.multi_reduction <add>, %1, %cst [1] : vector<16x32xf32> to vector<16xf32>
    %9 = vector.shape_cast %8 : vector<16xf32> to vector<16x1xf32>
    %cst_8 = arith.constant 3.200000e+01 : f32
    %10 = vector.broadcast %cst_8 : f32 to vector<16x1xf32>
    %11 = arith.divf %9, %10 : vector<16x1xf32>
    %12 = vector.broadcast %11 : vector<16x1xf32> to vector<16x32xf32>
    %13 = arith.subf %1, %12 : vector<16x32xf32>
    %14 = arith.mulf %13, %13 : vector<16x32xf32>
    %cst_9 = arith.constant dense<0.000000e+00> : vector<16xf32>
    %15 = vector.multi_reduction <add>, %14, %cst_9 [1] : vector<16x32xf32> to vector<16xf32>
    %16 = vector.shape_cast %15 : vector<16xf32> to vector<16x1xf32>
    %cst_10 = arith.constant 3.200000e+01 : f32
    %17 = vector.broadcast %cst_10 : f32 to vector<16x1xf32>
    %18 = arith.divf %16, %17 : vector<16x1xf32>
    %cst_11 = arith.constant 9.99999996E-13 : f32
    %19 = vector.broadcast %cst_11 : f32 to vector<16x1xf32>
    %20 = arith.addf %18, %19 : vector<16x1xf32>
    %21 = math.rsqrt %20 : vector<16x1xf32>
    %22 = vector.broadcast %21 : vector<16x1xf32> to vector<16x32xf32>
    %23 = arith.mulf %13, %22 : vector<16x32xf32>
    %c0_12 = arith.constant 0 : index
    %c0_13 = arith.constant 0 : index
    %24 = vector.load %arg3[%c0_12, %c0_13] : memref<32x128xf32, #tpu.memory_space<vmem>>, vector<1x32xf32>
    %25 = vector.broadcast %24 : vector<1x32xf32> to vector<16x32xf32>
    %26 = arith.mulf %23, %25 : vector<16x32xf32>
    %c1 = arith.constant 1 : index
    %c0_14 = arith.constant 0 : index
    %27 = vector.load %arg3[%c1, %c0_14] : memref<32x128xf32, #tpu.memory_space<vmem>>, vector<1x32xf32>
    %28 = vector.broadcast %27 : vector<1x32xf32> to vector<16x32xf32>
    %29 = arith.addf %26, %28 : vector<16x32xf32>
    %cst_15 = arith.constant 0.000000e+00 : f32
    %30 = vector.broadcast %cst_15 : f32 to vector<16x32xf32>
    %c0_16 = arith.constant 0 : index
    %c0_17 = arith.constant 0 : index
    %31 = vector.load %arg2[%c0_16, %c0_17] : memref<640x128xbf16, #tpu.memory_space<vmem>>, vector<32x16xbf16>
    %32 = arith.truncf %29 : vector<16x32xf32> to vector<16x32xbf16>
    %cst_18 = arith.constant dense<0.000000e+00> : vector<16x16xf32>
    %33 = tpu.matmul %32, %31, %cst_18 {dimension_numbers = #tpu.dot_dimension_numbers<[1], [0], [0], [1], [0, 0, 1, 1], [], []>} : vector<16x32xbf16>, vector<32x16xbf16>, vector<16x16xf32> -> vector<16x16xf32>
    %c2 = arith.constant 2 : index
    %c0_19 = arith.constant 0 : index
    %34 = vector.load %arg3[%c2, %c0_19] : memref<32x128xf32, #tpu.memory_space<vmem>>, vector<1x16xf32>
    %35 = vector.broadcast %34 : vector<1x16xf32> to vector<16x16xf32>
    %36 = arith.addf %33, %35 : vector<16x16xf32>
    %c32_20 = arith.constant 32 : index
    %c0_21 = arith.constant 0 : index
    %37 = vector.load %arg2[%c32_20, %c0_21] : memref<640x128xbf16, #tpu.memory_space<vmem>>, vector<32x16xbf16>
    %38 = arith.truncf %29 : vector<16x32xf32> to vector<16x32xbf16>
    %cst_22 = arith.constant dense<0.000000e+00> : vector<16x16xf32>
    %39 = tpu.matmul %38, %37, %cst_22 {dimension_numbers = #tpu.dot_dimension_numbers<[1], [0], [0], [1], [0, 0, 1, 1], [], []>} : vector<16x32xbf16>, vector<32x16xbf16>, vector<16x16xf32> -> vector<16x16xf32>
    %c3 = arith.constant 3 : index
    %c0_23 = arith.constant 0 : index
    %40 = vector.load %arg3[%c3, %c0_23] : memref<32x128xf32, #tpu.memory_space<vmem>>, vector<1x16xf32>
    %41 = vector.broadcast %40 : vector<1x16xf32> to vector<16x16xf32>
    %42 = arith.addf %39, %41 : vector<16x16xf32>
    %c64 = arith.constant 64 : index
    %c0_24 = arith.constant 0 : index
    %43 = vector.load %arg2[%c64, %c0_24] : memref<640x128xbf16, #tpu.memory_space<vmem>>, vector<32x16xbf16>
    %44 = arith.truncf %29 : vector<16x32xf32> to vector<16x32xbf16>
    %cst_25 = arith.constant dense<0.000000e+00> : vector<16x16xf32>
    %45 = tpu.matmul %44, %43, %cst_25 {dimension_numbers = #tpu.dot_dimension_numbers<[1], [0], [0], [1], [0, 0, 1, 1], [], []>} : vector<16x32xbf16>, vector<32x16xbf16>, vector<16x16xf32> -> vector<16x16xf32>
    %c4 = arith.constant 4 : index
    %c0_26 = arith.constant 0 : index
    %46 = vector.load %arg3[%c4, %c0_26] : memref<32x128xf32, #tpu.memory_space<vmem>>, vector<1x16xf32>
    %47 = vector.broadcast %46 : vector<1x16xf32> to vector<16x16xf32>
    %48 = arith.addf %45, %47 : vector<16x16xf32>
    %49 = arith.truncf %36 : vector<16x16xf32> to vector<16x16xbf16>
    %50 = arith.truncf %42 : vector<16x16xf32> to vector<16x16xbf16>
    %cst_27 = arith.constant dense<0.000000e+00> : vector<16x16xf32>
    %51 = tpu.matmul %49, %50, %cst_27 {dimension_numbers = #tpu.dot_dimension_numbers<[1], [1], [0], [0], [0, 0, 1, 0], [], []>} : vector<16x16xbf16>, vector<16x16xbf16>, vector<16x16xf32> -> vector<16x16xf32>
    %cst_28 = arith.constant 2.500000e-01 : f32
    %52 = vector.broadcast %cst_28 : f32 to vector<16x16xf32>
    %53 = arith.mulf %51, %52 : vector<16x16xf32>
    %54 = arith.addf %53, %3 : vector<16x16xf32>
    %cst_29 = arith.constant dense<0xFF800000> : vector<16xf32>
    %55 = vector.multi_reduction <maximumf>, %54, %cst_29 [1] : vector<16x16xf32> to vector<16xf32>
    %56 = vector.shape_cast %55 : vector<16xf32> to vector<16x1xf32>
    %57 = vector.broadcast %56 : vector<16x1xf32> to vector<16x16xf32>
    %58 = arith.subf %54, %57 : vector<16x16xf32>
    %59 = math.exp %58 : vector<16x16xf32>
    %cst_30 = arith.constant dense<0.000000e+00> : vector<16xf32>
    %60 = vector.multi_reduction <add>, %59, %cst_30 [1] : vector<16x16xf32> to vector<16xf32>
    %61 = vector.shape_cast %60 : vector<16xf32> to vector<16x1xf32>
    %62 = tpu.reciprocal %61 {approx = true} : vector<16x1xf32> -> vector<16x1xf32>
    %63 = vector.broadcast %62 : vector<16x1xf32> to vector<16x16xf32>
    %64 = arith.mulf %59, %63 : vector<16x16xf32>
    %65 = arith.truncf %64 : vector<16x16xf32> to vector<16x16xbf16>
    %66 = arith.truncf %48 : vector<16x16xf32> to vector<16x16xbf16>
    %cst_31 = arith.constant dense<0.000000e+00> : vector<16x16xf32>
    %67 = tpu.matmul %65, %66, %cst_31 {dimension_numbers = #tpu.dot_dimension_numbers<[1], [0], [0], [1], [0, 0, 1, 1], [], []>} : vector<16x16xbf16>, vector<16x16xbf16>, vector<16x16xf32> -> vector<16x16xf32>
    %c192 = arith.constant 192 : index
    %c0_32 = arith.constant 0 : index
    %68 = vector.load %arg2[%c192, %c0_32] : memref<640x128xbf16, #tpu.memory_space<vmem>>, vector<16x32xbf16>
    %69 = arith.truncf %67 : vector<16x16xf32> to vector<16x16xbf16>
    %cst_33 = arith.constant dense<0.000000e+00> : vector<16x32xf32>
    %70 = tpu.matmul %69, %68, %cst_33 {dimension_numbers = #tpu.dot_dimension_numbers<[1], [0], [0], [1], [0, 0, 1, 1], [], []>} : vector<16x16xbf16>, vector<16x32xbf16>, vector<16x32xf32> -> vector<16x32xf32>
    %71 = arith.addf %30, %70 : vector<16x32xf32>
    %c96 = arith.constant 96 : index
    %c0_34 = arith.constant 0 : index
    %72 = vector.load %arg2[%c96, %c0_34] : memref<640x128xbf16, #tpu.memory_space<vmem>>, vector<32x16xbf16>
    %73 = arith.truncf %29 : vector<16x32xf32> to vector<16x32xbf16>
    %cst_35 = arith.constant dense<0.000000e+00> : vector<16x16xf32>
    %74 = tpu.matmul %73, %72, %cst_35 {dimension_numbers = #tpu.dot_dimension_numbers<[1], [0], [0], [1], [0, 0, 1, 1], [], []>} : vector<16x32xbf16>, vector<32x16xbf16>, vector<16x16xf32> -> vector<16x16xf32>
    %c5 = arith.constant 5 : index
    %c0_36 = arith.constant 0 : index
    %75 = vector.load %arg3[%c5, %c0_36] : memref<32x128xf32, #tpu.memory_space<vmem>>, vector<1x16xf32>
    %76 = vector.broadcast %75 : vector<1x16xf32> to vector<16x16xf32>
    %77 = arith.addf %74, %76 : vector<16x16xf32>
    %c128 = arith.constant 128 : index
    %c0_37 = arith.constant 0 : index
    %78 = vector.load %arg2[%c128, %c0_37] : memref<640x128xbf16, #tpu.memory_space<vmem>>, vector<32x16xbf16>
    %79 = arith.truncf %29 : vector<16x32xf32> to vector<16x32xbf16>
    %cst_38 = arith.constant dense<0.000000e+00> : vector<16x16xf32>
    %80 = tpu.matmul %79, %78, %cst_38 {dimension_numbers = #tpu.dot_dimension_numbers<[1], [0], [0], [1], [0, 0, 1, 1], [], []>} : vector<16x32xbf16>, vector<32x16xbf16>, vector<16x16xf32> -> vector<16x16xf32>
    %c6 = arith.constant 6 : index
    %c0_39 = arith.constant 0 : index
    %81 = vector.load %arg3[%c6, %c0_39] : memref<32x128xf32, #tpu.memory_space<vmem>>, vector<1x16xf32>
    %82 = vector.broadcast %81 : vector<1x16xf32> to vector<16x16xf32>
    %83 = arith.addf %80, %82 : vector<16x16xf32>
    %c160 = arith.constant 160 : index
    %c0_40 = arith.constant 0 : index
    %84 = vector.load %arg2[%c160, %c0_40] : memref<640x128xbf16, #tpu.memory_space<vmem>>, vector<32x16xbf16>
    %85 = arith.truncf %29 : vector<16x32xf32> to vector<16x32xbf16>
    %cst_41 = arith.constant dense<0.000000e+00> : vector<16x16xf32>
    %86 = tpu.matmul %85, %84, %cst_41 {dimension_numbers = #tpu.dot_dimension_numbers<[1], [0], [0], [1], [0, 0, 1, 1], [], []>} : vector<16x32xbf16>, vector<32x16xbf16>, vector<16x16xf32> -> vector<16x16xf32>
    %c7 = arith.constant 7 : index
    %c0_42 = arith.constant 0 : index
    %87 = vector.load %arg3[%c7, %c0_42] : memref<32x128xf32, #tpu.memory_space<vmem>>, vector<1x16xf32>
    %88 = vector.broadcast %87 : vector<1x16xf32> to vector<16x16xf32>
    %89 = arith.addf %86, %88 : vector<16x16xf32>
    %90 = arith.truncf %77 : vector<16x16xf32> to vector<16x16xbf16>
    %91 = arith.truncf %83 : vector<16x16xf32> to vector<16x16xbf16>
    %cst_43 = arith.constant dense<0.000000e+00> : vector<16x16xf32>
    %92 = tpu.matmul %90, %91, %cst_43 {dimension_numbers = #tpu.dot_dimension_numbers<[1], [1], [0], [0], [0, 0, 1, 0], [], []>} : vector<16x16xbf16>, vector<16x16xbf16>, vector<16x16xf32> -> vector<16x16xf32>
    %cst_44 = arith.constant 2.500000e-01 : f32
    %93 = vector.broadcast %cst_44 : f32 to vector<16x16xf32>
    %94 = arith.mulf %92, %93 : vector<16x16xf32>
    %95 = arith.addf %94, %3 : vector<16x16xf32>
    %cst_45 = arith.constant dense<0xFF800000> : vector<16xf32>
    %96 = vector.multi_reduction <maximumf>, %95, %cst_45 [1] : vector<16x16xf32> to vector<16xf32>
    %97 = vector.shape_cast %96 : vector<16xf32> to vector<16x1xf32>
    %98 = vector.broadcast %97 : vector<16x1xf32> to vector<16x16xf32>
    %99 = arith.subf %95, %98 : vector<16x16xf32>
    %100 = math.exp %99 : vector<16x16xf32>
    %cst_46 = arith.constant dense<0.000000e+00> : vector<16xf32>
    %101 = vector.multi_reduction <add>, %100, %cst_46 [1] : vector<16x16xf32> to vector<16xf32>
    %102 = vector.shape_cast %101 : vector<16xf32> to vector<16x1xf32>
    %103 = tpu.reciprocal %102 {approx = true} : vector<16x1xf32> -> vector<16x1xf32>
    %104 = vector.broadcast %103 : vector<16x1xf32> to vector<16x16xf32>
    %105 = arith.mulf %100, %104 : vector<16x16xf32>
    %106 = arith.truncf %105 : vector<16x16xf32> to vector<16x16xbf16>
    %107 = arith.truncf %89 : vector<16x16xf32> to vector<16x16xbf16>
    %cst_47 = arith.constant dense<0.000000e+00> : vector<16x16xf32>
    %108 = tpu.matmul %106, %107, %cst_47 {dimension_numbers = #tpu.dot_dimension_numbers<[1], [0], [0], [1], [0, 0, 1, 1], [], []>} : vector<16x16xbf16>, vector<16x16xbf16>, vector<16x16xf32> -> vector<16x16xf32>
    %c208 = arith.constant 208 : index
    %c0_48 = arith.constant 0 : index
    %109 = vector.load %arg2[%c208, %c0_48] : memref<640x128xbf16, #tpu.memory_space<vmem>>, vector<16x32xbf16>
    %110 = arith.truncf %108 : vector<16x16xf32> to vector<16x16xbf16>
    %cst_49 = arith.constant dense<0.000000e+00> : vector<16x32xf32>
    %111 = tpu.matmul %110, %109, %cst_49 {dimension_numbers = #tpu.dot_dimension_numbers<[1], [0], [0], [1], [0, 0, 1, 1], [], []>} : vector<16x16xbf16>, vector<16x32xbf16>, vector<16x32xf32> -> vector<16x32xf32>
    %112 = arith.addf %71, %111 : vector<16x32xf32>
    %c8 = arith.constant 8 : index
    %c0_50 = arith.constant 0 : index
    %113 = vector.load %arg3[%c8, %c0_50] : memref<32x128xf32, #tpu.memory_space<vmem>>, vector<1x32xf32>
    %114 = vector.broadcast %113 : vector<1x32xf32> to vector<16x32xf32>
    %115 = arith.addf %112, %114 : vector<16x32xf32>
    %116 = arith.addf %29, %115 : vector<16x32xf32>
    %cst_51 = arith.constant dense<0.000000e+00> : vector<16xf32>
    %117 = vector.multi_reduction <add>, %116, %cst_51 [1] : vector<16x32xf32> to vector<16xf32>
    %118 = vector.shape_cast %117 : vector<16xf32> to vector<16x1xf32>
    %cst_52 = arith.constant 3.200000e+01 : f32
    %119 = vector.broadcast %cst_52 : f32 to vector<16x1xf32>
    %120 = arith.divf %118, %119 : vector<16x1xf32>
    %121 = vector.broadcast %120 : vector<16x1xf32> to vector<16x32xf32>
    %122 = arith.subf %116, %121 : vector<16x32xf32>
    %123 = arith.mulf %122, %122 : vector<16x32xf32>
    %cst_53 = arith.constant dense<0.000000e+00> : vector<16xf32>
    %124 = vector.multi_reduction <add>, %123, %cst_53 [1] : vector<16x32xf32> to vector<16xf32>
    %125 = vector.shape_cast %124 : vector<16xf32> to vector<16x1xf32>
    %cst_54 = arith.constant 3.200000e+01 : f32
    %126 = vector.broadcast %cst_54 : f32 to vector<16x1xf32>
    %127 = arith.divf %125, %126 : vector<16x1xf32>
    %cst_55 = arith.constant 9.99999996E-13 : f32
    %128 = vector.broadcast %cst_55 : f32 to vector<16x1xf32>
    %129 = arith.addf %127, %128 : vector<16x1xf32>
    %130 = math.rsqrt %129 : vector<16x1xf32>
    %131 = vector.broadcast %130 : vector<16x1xf32> to vector<16x32xf32>
    %132 = arith.mulf %122, %131 : vector<16x32xf32>
    %c9 = arith.constant 9 : index
    %c0_56 = arith.constant 0 : index
    %133 = vector.load %arg3[%c9, %c0_56] : memref<32x128xf32, #tpu.memory_space<vmem>>, vector<1x32xf32>
    %134 = vector.broadcast %133 : vector<1x32xf32> to vector<16x32xf32>
    %135 = arith.mulf %132, %134 : vector<16x32xf32>
    %c10 = arith.constant 10 : index
    %c0_57 = arith.constant 0 : index
    %136 = vector.load %arg3[%c10, %c0_57] : memref<32x128xf32, #tpu.memory_space<vmem>>, vector<1x32xf32>
    %137 = vector.broadcast %136 : vector<1x32xf32> to vector<16x32xf32>
    %138 = arith.addf %135, %137 : vector<16x32xf32>
    %c224 = arith.constant 224 : index
    %c0_58 = arith.constant 0 : index
    %139 = vector.load %arg2[%c224, %c0_58] : memref<640x128xbf16, #tpu.memory_space<vmem>>, vector<32x64xbf16>
    %140 = arith.truncf %138 : vector<16x32xf32> to vector<16x32xbf16>
    %cst_59 = arith.constant dense<0.000000e+00> : vector<16x64xf32>
    %141 = tpu.matmul %140, %139, %cst_59 {dimension_numbers = #tpu.dot_dimension_numbers<[1], [0], [0], [1], [0, 0, 1, 1], [], []>} : vector<16x32xbf16>, vector<32x64xbf16>, vector<16x64xf32> -> vector<16x64xf32>
    %c11 = arith.constant 11 : index
    %c0_60 = arith.constant 0 : index
    %142 = vector.load %arg3[%c11, %c0_60] : memref<32x128xf32, #tpu.memory_space<vmem>>, vector<1x64xf32>
    %143 = vector.broadcast %142 : vector<1x64xf32> to vector<16x64xf32>
    %144 = arith.addf %141, %143 : vector<16x64xf32>
    %cst_61 = arith.constant 5.000000e-01 : f32
    %145 = vector.broadcast %cst_61 : f32 to vector<16x64xf32>
    %146 = arith.mulf %145, %144 : vector<16x64xf32>
    %cst_62 = arith.constant 4.471500e-02 : f32
    %147 = vector.broadcast %cst_62 : f32 to vector<16x64xf32>
    %148 = arith.mulf %147, %144 : vector<16x64xf32>
    %149 = arith.mulf %148, %144 : vector<16x64xf32>
    %150 = arith.mulf %149, %144 : vector<16x64xf32>
    %151 = arith.addf %144, %150 : vector<16x64xf32>
    %cst_63 = arith.constant 0.797884583 : f32
    %152 = vector.broadcast %cst_63 : f32 to vector<16x64xf32>
    %153 = arith.mulf %152, %151 : vector<16x64xf32>
    %154 = math.tanh %153 : vector<16x64xf32>
    %cst_64 = arith.constant 1.000000e+00 : f32
    %155 = vector.broadcast %cst_64 : f32 to vector<16x64xf32>
    %156 = arith.addf %155, %154 : vector<16x64xf32>
    %157 = arith.mulf %146, %156 : vector<16x64xf32>
    %c256 = arith.constant 256 : index
    %c0_65 = arith.constant 0 : index
    %158 = vector.load %arg2[%c256, %c0_65] : memref<640x128xbf16, #tpu.memory_space<vmem>>, vector<64x32xbf16>
    %159 = arith.truncf %157 : vector<16x64xf32> to vector<16x64xbf16>
    %cst_66 = arith.constant dense<0.000000e+00> : vector<16x32xf32>
    %160 = tpu.matmul %159, %158, %cst_66 {dimension_numbers = #tpu.dot_dimension_numbers<[1], [0], [0], [1], [0, 0, 1, 1], [], []>} : vector<16x64xbf16>, vector<64x32xbf16>, vector<16x32xf32> -> vector<16x32xf32>
    %c12 = arith.constant 12 : index
    %c0_67 = arith.constant 0 : index
    %161 = vector.load %arg3[%c12, %c0_67] : memref<32x128xf32, #tpu.memory_space<vmem>>, vector<1x32xf32>
    %162 = vector.broadcast %161 : vector<1x32xf32> to vector<16x32xf32>
    %163 = arith.addf %160, %162 : vector<16x32xf32>
    %164 = arith.addf %138, %163 : vector<16x32xf32>
    %cst_68 = arith.constant dense<0.000000e+00> : vector<16xf32>
    %165 = vector.multi_reduction <add>, %164, %cst_68 [1] : vector<16x32xf32> to vector<16xf32>
    %166 = vector.shape_cast %165 : vector<16xf32> to vector<16x1xf32>
    %cst_69 = arith.constant 3.200000e+01 : f32
    %167 = vector.broadcast %cst_69 : f32 to vector<16x1xf32>
    %168 = arith.divf %166, %167 : vector<16x1xf32>
    %169 = vector.broadcast %168 : vector<16x1xf32> to vector<16x32xf32>
    %170 = arith.subf %164, %169 : vector<16x32xf32>
    %171 = arith.mulf %170, %170 : vector<16x32xf32>
    %cst_70 = arith.constant dense<0.000000e+00> : vector<16xf32>
    %172 = vector.multi_reduction <add>, %171, %cst_70 [1] : vector<16x32xf32> to vector<16xf32>
    %173 = vector.shape_cast %172 : vector<16xf32> to vector<16x1xf32>
    %cst_71 = arith.constant 3.200000e+01 : f32
    %174 = vector.broadcast %cst_71 : f32 to vector<16x1xf32>
    %175 = arith.divf %173, %174 : vector<16x1xf32>
    %cst_72 = arith.constant 9.99999996E-13 : f32
    %176 = vector.broadcast %cst_72 : f32 to vector<16x1xf32>
    %177 = arith.addf %175, %176 : vector<16x1xf32>
    %178 = math.rsqrt %177 : vector<16x1xf32>
    %179 = vector.broadcast %178 : vector<16x1xf32> to vector<16x32xf32>
    %180 = arith.mulf %170, %179 : vector<16x32xf32>
    %c13 = arith.constant 13 : index
    %c0_73 = arith.constant 0 : index
    %181 = vector.load %arg3[%c13, %c0_73] : memref<32x128xf32, #tpu.memory_space<vmem>>, vector<1x32xf32>
    %182 = vector.broadcast %181 : vector<1x32xf32> to vector<16x32xf32>
    %183 = arith.mulf %180, %182 : vector<16x32xf32>
    %c14 = arith.constant 14 : index
    %c0_74 = arith.constant 0 : index
    %184 = vector.load %arg3[%c14, %c0_74] : memref<32x128xf32, #tpu.memory_space<vmem>>, vector<1x32xf32>
    %185 = vector.broadcast %184 : vector<1x32xf32> to vector<16x32xf32>
    %186 = arith.addf %183, %185 : vector<16x32xf32>
    %cst_75 = arith.constant 0.000000e+00 : f32
    %187 = vector.broadcast %cst_75 : f32 to vector<16x32xf32>
    %c320 = arith.constant 320 : index
    %c0_76 = arith.constant 0 : index
    %188 = vector.load %arg2[%c320, %c0_76] : memref<640x128xbf16, #tpu.memory_space<vmem>>, vector<32x16xbf16>
    %189 = arith.truncf %186 : vector<16x32xf32> to vector<16x32xbf16>
    %cst_77 = arith.constant dense<0.000000e+00> : vector<16x16xf32>
    %190 = tpu.matmul %189, %188, %cst_77 {dimension_numbers = #tpu.dot_dimension_numbers<[1], [0], [0], [1], [0, 0, 1, 1], [], []>} : vector<16x32xbf16>, vector<32x16xbf16>, vector<16x16xf32> -> vector<16x16xf32>
    %c15 = arith.constant 15 : index
    %c0_78 = arith.constant 0 : index
    %191 = vector.load %arg3[%c15, %c0_78] : memref<32x128xf32, #tpu.memory_space<vmem>>, vector<1x16xf32>
    %192 = vector.broadcast %191 : vector<1x16xf32> to vector<16x16xf32>
    %193 = arith.addf %190, %192 : vector<16x16xf32>
    %c352 = arith.constant 352 : index
    %c0_79 = arith.constant 0 : index
    %194 = vector.load %arg2[%c352, %c0_79] : memref<640x128xbf16, #tpu.memory_space<vmem>>, vector<32x16xbf16>
    %195 = arith.truncf %186 : vector<16x32xf32> to vector<16x32xbf16>
    %cst_80 = arith.constant dense<0.000000e+00> : vector<16x16xf32>
    %196 = tpu.matmul %195, %194, %cst_80 {dimension_numbers = #tpu.dot_dimension_numbers<[1], [0], [0], [1], [0, 0, 1, 1], [], []>} : vector<16x32xbf16>, vector<32x16xbf16>, vector<16x16xf32> -> vector<16x16xf32>
    %c16 = arith.constant 16 : index
    %c0_81 = arith.constant 0 : index
    %197 = vector.load %arg3[%c16, %c0_81] : memref<32x128xf32, #tpu.memory_space<vmem>>, vector<1x16xf32>
    %198 = vector.broadcast %197 : vector<1x16xf32> to vector<16x16xf32>
    %199 = arith.addf %196, %198 : vector<16x16xf32>
    %c384 = arith.constant 384 : index
    %c0_82 = arith.constant 0 : index
    %200 = vector.load %arg2[%c384, %c0_82] : memref<640x128xbf16, #tpu.memory_space<vmem>>, vector<32x16xbf16>
    %201 = arith.truncf %186 : vector<16x32xf32> to vector<16x32xbf16>
    %cst_83 = arith.constant dense<0.000000e+00> : vector<16x16xf32>
    %202 = tpu.matmul %201, %200, %cst_83 {dimension_numbers = #tpu.dot_dimension_numbers<[1], [0], [0], [1], [0, 0, 1, 1], [], []>} : vector<16x32xbf16>, vector<32x16xbf16>, vector<16x16xf32> -> vector<16x16xf32>
    %c17 = arith.constant 17 : index
    %c0_84 = arith.constant 0 : index
    %203 = vector.load %arg3[%c17, %c0_84] : memref<32x128xf32, #tpu.memory_space<vmem>>, vector<1x16xf32>
    %204 = vector.broadcast %203 : vector<1x16xf32> to vector<16x16xf32>
    %205 = arith.addf %202, %204 : vector<16x16xf32>
    %206 = arith.truncf %193 : vector<16x16xf32> to vector<16x16xbf16>
    %207 = arith.truncf %199 : vector<16x16xf32> to vector<16x16xbf16>
    %cst_85 = arith.constant dense<0.000000e+00> : vector<16x16xf32>
    %208 = tpu.matmul %206, %207, %cst_85 {dimension_numbers = #tpu.dot_dimension_numbers<[1], [1], [0], [0], [0, 0, 1, 0], [], []>} : vector<16x16xbf16>, vector<16x16xbf16>, vector<16x16xf32> -> vector<16x16xf32>
    %cst_86 = arith.constant 2.500000e-01 : f32
    %209 = vector.broadcast %cst_86 : f32 to vector<16x16xf32>
    %210 = arith.mulf %208, %209 : vector<16x16xf32>
    %211 = arith.addf %210, %3 : vector<16x16xf32>
    %cst_87 = arith.constant dense<0xFF800000> : vector<16xf32>
    %212 = vector.multi_reduction <maximumf>, %211, %cst_87 [1] : vector<16x16xf32> to vector<16xf32>
    %213 = vector.shape_cast %212 : vector<16xf32> to vector<16x1xf32>
    %214 = vector.broadcast %213 : vector<16x1xf32> to vector<16x16xf32>
    %215 = arith.subf %211, %214 : vector<16x16xf32>
    %216 = math.exp %215 : vector<16x16xf32>
    %cst_88 = arith.constant dense<0.000000e+00> : vector<16xf32>
    %217 = vector.multi_reduction <add>, %216, %cst_88 [1] : vector<16x16xf32> to vector<16xf32>
    %218 = vector.shape_cast %217 : vector<16xf32> to vector<16x1xf32>
    %219 = tpu.reciprocal %218 {approx = true} : vector<16x1xf32> -> vector<16x1xf32>
    %220 = vector.broadcast %219 : vector<16x1xf32> to vector<16x16xf32>
    %221 = arith.mulf %216, %220 : vector<16x16xf32>
    %222 = arith.truncf %221 : vector<16x16xf32> to vector<16x16xbf16>
    %223 = arith.truncf %205 : vector<16x16xf32> to vector<16x16xbf16>
    %cst_89 = arith.constant dense<0.000000e+00> : vector<16x16xf32>
    %224 = tpu.matmul %222, %223, %cst_89 {dimension_numbers = #tpu.dot_dimension_numbers<[1], [0], [0], [1], [0, 0, 1, 1], [], []>} : vector<16x16xbf16>, vector<16x16xbf16>, vector<16x16xf32> -> vector<16x16xf32>
    %c512 = arith.constant 512 : index
    %c0_90 = arith.constant 0 : index
    %225 = vector.load %arg2[%c512, %c0_90] : memref<640x128xbf16, #tpu.memory_space<vmem>>, vector<16x32xbf16>
    %226 = arith.truncf %224 : vector<16x16xf32> to vector<16x16xbf16>
    %cst_91 = arith.constant dense<0.000000e+00> : vector<16x32xf32>
    %227 = tpu.matmul %226, %225, %cst_91 {dimension_numbers = #tpu.dot_dimension_numbers<[1], [0], [0], [1], [0, 0, 1, 1], [], []>} : vector<16x16xbf16>, vector<16x32xbf16>, vector<16x32xf32> -> vector<16x32xf32>
    %228 = arith.addf %187, %227 : vector<16x32xf32>
    %c416 = arith.constant 416 : index
    %c0_92 = arith.constant 0 : index
    %229 = vector.load %arg2[%c416, %c0_92] : memref<640x128xbf16, #tpu.memory_space<vmem>>, vector<32x16xbf16>
    %230 = arith.truncf %186 : vector<16x32xf32> to vector<16x32xbf16>
    %cst_93 = arith.constant dense<0.000000e+00> : vector<16x16xf32>
    %231 = tpu.matmul %230, %229, %cst_93 {dimension_numbers = #tpu.dot_dimension_numbers<[1], [0], [0], [1], [0, 0, 1, 1], [], []>} : vector<16x32xbf16>, vector<32x16xbf16>, vector<16x16xf32> -> vector<16x16xf32>
    %c18 = arith.constant 18 : index
    %c0_94 = arith.constant 0 : index
    %232 = vector.load %arg3[%c18, %c0_94] : memref<32x128xf32, #tpu.memory_space<vmem>>, vector<1x16xf32>
    %233 = vector.broadcast %232 : vector<1x16xf32> to vector<16x16xf32>
    %234 = arith.addf %231, %233 : vector<16x16xf32>
    %c448 = arith.constant 448 : index
    %c0_95 = arith.constant 0 : index
    %235 = vector.load %arg2[%c448, %c0_95] : memref<640x128xbf16, #tpu.memory_space<vmem>>, vector<32x16xbf16>
    %236 = arith.truncf %186 : vector<16x32xf32> to vector<16x32xbf16>
    %cst_96 = arith.constant dense<0.000000e+00> : vector<16x16xf32>
    %237 = tpu.matmul %236, %235, %cst_96 {dimension_numbers = #tpu.dot_dimension_numbers<[1], [0], [0], [1], [0, 0, 1, 1], [], []>} : vector<16x32xbf16>, vector<32x16xbf16>, vector<16x16xf32> -> vector<16x16xf32>
    %c19 = arith.constant 19 : index
    %c0_97 = arith.constant 0 : index
    %238 = vector.load %arg3[%c19, %c0_97] : memref<32x128xf32, #tpu.memory_space<vmem>>, vector<1x16xf32>
    %239 = vector.broadcast %238 : vector<1x16xf32> to vector<16x16xf32>
    %240 = arith.addf %237, %239 : vector<16x16xf32>
    %c480 = arith.constant 480 : index
    %c0_98 = arith.constant 0 : index
    %241 = vector.load %arg2[%c480, %c0_98] : memref<640x128xbf16, #tpu.memory_space<vmem>>, vector<32x16xbf16>
    %242 = arith.truncf %186 : vector<16x32xf32> to vector<16x32xbf16>
    %cst_99 = arith.constant dense<0.000000e+00> : vector<16x16xf32>
    %243 = tpu.matmul %242, %241, %cst_99 {dimension_numbers = #tpu.dot_dimension_numbers<[1], [0], [0], [1], [0, 0, 1, 1], [], []>} : vector<16x32xbf16>, vector<32x16xbf16>, vector<16x16xf32> -> vector<16x16xf32>
    %c20 = arith.constant 20 : index
    %c0_100 = arith.constant 0 : index
    %244 = vector.load %arg3[%c20, %c0_100] : memref<32x128xf32, #tpu.memory_space<vmem>>, vector<1x16xf32>
    %245 = vector.broadcast %244 : vector<1x16xf32> to vector<16x16xf32>
    %246 = arith.addf %243, %245 : vector<16x16xf32>
    %247 = arith.truncf %234 : vector<16x16xf32> to vector<16x16xbf16>
    %248 = arith.truncf %240 : vector<16x16xf32> to vector<16x16xbf16>
    %cst_101 = arith.constant dense<0.000000e+00> : vector<16x16xf32>
    %249 = tpu.matmul %247, %248, %cst_101 {dimension_numbers = #tpu.dot_dimension_numbers<[1], [1], [0], [0], [0, 0, 1, 0], [], []>} : vector<16x16xbf16>, vector<16x16xbf16>, vector<16x16xf32> -> vector<16x16xf32>
    %cst_102 = arith.constant 2.500000e-01 : f32
    %250 = vector.broadcast %cst_102 : f32 to vector<16x16xf32>
    %251 = arith.mulf %249, %250 : vector<16x16xf32>
    %252 = arith.addf %251, %3 : vector<16x16xf32>
    %cst_103 = arith.constant dense<0xFF800000> : vector<16xf32>
    %253 = vector.multi_reduction <maximumf>, %252, %cst_103 [1] : vector<16x16xf32> to vector<16xf32>
    %254 = vector.shape_cast %253 : vector<16xf32> to vector<16x1xf32>
    %255 = vector.broadcast %254 : vector<16x1xf32> to vector<16x16xf32>
    %256 = arith.subf %252, %255 : vector<16x16xf32>
    %257 = math.exp %256 : vector<16x16xf32>
    %cst_104 = arith.constant dense<0.000000e+00> : vector<16xf32>
    %258 = vector.multi_reduction <add>, %257, %cst_104 [1] : vector<16x16xf32> to vector<16xf32>
    %259 = vector.shape_cast %258 : vector<16xf32> to vector<16x1xf32>
    %260 = tpu.reciprocal %259 {approx = true} : vector<16x1xf32> -> vector<16x1xf32>
    %261 = vector.broadcast %260 : vector<16x1xf32> to vector<16x16xf32>
    %262 = arith.mulf %257, %261 : vector<16x16xf32>
    %263 = arith.truncf %262 : vector<16x16xf32> to vector<16x16xbf16>
    %264 = arith.truncf %246 : vector<16x16xf32> to vector<16x16xbf16>
    %cst_105 = arith.constant dense<0.000000e+00> : vector<16x16xf32>
    %265 = tpu.matmul %263, %264, %cst_105 {dimension_numbers = #tpu.dot_dimension_numbers<[1], [0], [0], [1], [0, 0, 1, 1], [], []>} : vector<16x16xbf16>, vector<16x16xbf16>, vector<16x16xf32> -> vector<16x16xf32>
    %c528 = arith.constant 528 : index
    %c0_106 = arith.constant 0 : index
    %266 = vector.load %arg2[%c528, %c0_106] : memref<640x128xbf16, #tpu.memory_space<vmem>>, vector<16x32xbf16>
    %267 = arith.truncf %265 : vector<16x16xf32> to vector<16x16xbf16>
    %cst_107 = arith.constant dense<0.000000e+00> : vector<16x32xf32>
    %268 = tpu.matmul %267, %266, %cst_107 {dimension_numbers = #tpu.dot_dimension_numbers<[1], [0], [0], [1], [0, 0, 1, 1], [], []>} : vector<16x16xbf16>, vector<16x32xbf16>, vector<16x32xf32> -> vector<16x32xf32>
    %269 = arith.addf %228, %268 : vector<16x32xf32>
    %c21 = arith.constant 21 : index
    %c0_108 = arith.constant 0 : index
    %270 = vector.load %arg3[%c21, %c0_108] : memref<32x128xf32, #tpu.memory_space<vmem>>, vector<1x32xf32>
    %271 = vector.broadcast %270 : vector<1x32xf32> to vector<16x32xf32>
    %272 = arith.addf %269, %271 : vector<16x32xf32>
    %273 = arith.addf %186, %272 : vector<16x32xf32>
    %cst_109 = arith.constant dense<0.000000e+00> : vector<16xf32>
    %274 = vector.multi_reduction <add>, %273, %cst_109 [1] : vector<16x32xf32> to vector<16xf32>
    %275 = vector.shape_cast %274 : vector<16xf32> to vector<16x1xf32>
    %cst_110 = arith.constant 3.200000e+01 : f32
    %276 = vector.broadcast %cst_110 : f32 to vector<16x1xf32>
    %277 = arith.divf %275, %276 : vector<16x1xf32>
    %278 = vector.broadcast %277 : vector<16x1xf32> to vector<16x32xf32>
    %279 = arith.subf %273, %278 : vector<16x32xf32>
    %280 = arith.mulf %279, %279 : vector<16x32xf32>
    %cst_111 = arith.constant dense<0.000000e+00> : vector<16xf32>
    %281 = vector.multi_reduction <add>, %280, %cst_111 [1] : vector<16x32xf32> to vector<16xf32>
    %282 = vector.shape_cast %281 : vector<16xf32> to vector<16x1xf32>
    %cst_112 = arith.constant 3.200000e+01 : f32
    %283 = vector.broadcast %cst_112 : f32 to vector<16x1xf32>
    %284 = arith.divf %282, %283 : vector<16x1xf32>
    %cst_113 = arith.constant 9.99999996E-13 : f32
    %285 = vector.broadcast %cst_113 : f32 to vector<16x1xf32>
    %286 = arith.addf %284, %285 : vector<16x1xf32>
    %287 = math.rsqrt %286 : vector<16x1xf32>
    %288 = vector.broadcast %287 : vector<16x1xf32> to vector<16x32xf32>
    %289 = arith.mulf %279, %288 : vector<16x32xf32>
    %c22 = arith.constant 22 : index
    %c0_114 = arith.constant 0 : index
    %290 = vector.load %arg3[%c22, %c0_114] : memref<32x128xf32, #tpu.memory_space<vmem>>, vector<1x32xf32>
    %291 = vector.broadcast %290 : vector<1x32xf32> to vector<16x32xf32>
    %292 = arith.mulf %289, %291 : vector<16x32xf32>
    %c23 = arith.constant 23 : index
    %c0_115 = arith.constant 0 : index
    %293 = vector.load %arg3[%c23, %c0_115] : memref<32x128xf32, #tpu.memory_space<vmem>>, vector<1x32xf32>
    %294 = vector.broadcast %293 : vector<1x32xf32> to vector<16x32xf32>
    %295 = arith.addf %292, %294 : vector<16x32xf32>
    %c544 = arith.constant 544 : index
    %c0_116 = arith.constant 0 : index
    %296 = vector.load %arg2[%c544, %c0_116] : memref<640x128xbf16, #tpu.memory_space<vmem>>, vector<32x64xbf16>
    %297 = arith.truncf %295 : vector<16x32xf32> to vector<16x32xbf16>
    %cst_117 = arith.constant dense<0.000000e+00> : vector<16x64xf32>
    %298 = tpu.matmul %297, %296, %cst_117 {dimension_numbers = #tpu.dot_dimension_numbers<[1], [0], [0], [1], [0, 0, 1, 1], [], []>} : vector<16x32xbf16>, vector<32x64xbf16>, vector<16x64xf32> -> vector<16x64xf32>
    %c24 = arith.constant 24 : index
    %c0_118 = arith.constant 0 : index
    %299 = vector.load %arg3[%c24, %c0_118] : memref<32x128xf32, #tpu.memory_space<vmem>>, vector<1x64xf32>
    %300 = vector.broadcast %299 : vector<1x64xf32> to vector<16x64xf32>
    %301 = arith.addf %298, %300 : vector<16x64xf32>
    %cst_119 = arith.constant 5.000000e-01 : f32
    %302 = vector.broadcast %cst_119 : f32 to vector<16x64xf32>
    %303 = arith.mulf %302, %301 : vector<16x64xf32>
    %cst_120 = arith.constant 4.471500e-02 : f32
    %304 = vector.broadcast %cst_120 : f32 to vector<16x64xf32>
    %305 = arith.mulf %304, %301 : vector<16x64xf32>
    %306 = arith.mulf %305, %301 : vector<16x64xf32>
    %307 = arith.mulf %306, %301 : vector<16x64xf32>
    %308 = arith.addf %301, %307 : vector<16x64xf32>
    %cst_121 = arith.constant 0.797884583 : f32
    %309 = vector.broadcast %cst_121 : f32 to vector<16x64xf32>
    %310 = arith.mulf %309, %308 : vector<16x64xf32>
    %311 = math.tanh %310 : vector<16x64xf32>
    %cst_122 = arith.constant 1.000000e+00 : f32
    %312 = vector.broadcast %cst_122 : f32 to vector<16x64xf32>
    %313 = arith.addf %312, %311 : vector<16x64xf32>
    %314 = arith.mulf %303, %313 : vector<16x64xf32>
    %c576 = arith.constant 576 : index
    %c0_123 = arith.constant 0 : index
    %315 = vector.load %arg2[%c576, %c0_123] : memref<640x128xbf16, #tpu.memory_space<vmem>>, vector<64x32xbf16>
    %316 = arith.truncf %314 : vector<16x64xf32> to vector<16x64xbf16>
    %cst_124 = arith.constant dense<0.000000e+00> : vector<16x32xf32>
    %317 = tpu.matmul %316, %315, %cst_124 {dimension_numbers = #tpu.dot_dimension_numbers<[1], [0], [0], [1], [0, 0, 1, 1], [], []>} : vector<16x64xbf16>, vector<64x32xbf16>, vector<16x32xf32> -> vector<16x32xf32>
    %c25 = arith.constant 25 : index
    %c0_125 = arith.constant 0 : index
    %318 = vector.load %arg3[%c25, %c0_125] : memref<32x128xf32, #tpu.memory_space<vmem>>, vector<1x32xf32>
    %319 = vector.broadcast %318 : vector<1x32xf32> to vector<16x32xf32>
    %320 = arith.addf %317, %319 : vector<16x32xf32>
    %321 = arith.addf %295, %320 : vector<16x32xf32>
    %cst_126 = arith.constant dense<0.000000e+00> : vector<16xf32>
    %322 = vector.multi_reduction <add>, %321, %cst_126 [1] : vector<16x32xf32> to vector<16xf32>
    %323 = vector.shape_cast %322 : vector<16xf32> to vector<16x1xf32>
    %cst_127 = arith.constant 3.200000e+01 : f32
    %324 = vector.broadcast %cst_127 : f32 to vector<16x1xf32>
    %325 = arith.divf %323, %324 : vector<16x1xf32>
    %326 = vector.broadcast %325 : vector<16x1xf32> to vector<16x32xf32>
    %327 = arith.subf %321, %326 : vector<16x32xf32>
    %328 = arith.mulf %327, %327 : vector<16x32xf32>
    %cst_128 = arith.constant dense<0.000000e+00> : vector<16xf32>
    %329 = vector.multi_reduction <add>, %328, %cst_128 [1] : vector<16x32xf32> to vector<16xf32>
    %330 = vector.shape_cast %329 : vector<16xf32> to vector<16x1xf32>
    %cst_129 = arith.constant 3.200000e+01 : f32
    %331 = vector.broadcast %cst_129 : f32 to vector<16x1xf32>
    %332 = arith.divf %330, %331 : vector<16x1xf32>
    %cst_130 = arith.constant 9.99999996E-13 : f32
    %333 = vector.broadcast %cst_130 : f32 to vector<16x1xf32>
    %334 = arith.addf %332, %333 : vector<16x1xf32>
    %335 = math.rsqrt %334 : vector<16x1xf32>
    %336 = vector.broadcast %335 : vector<16x1xf32> to vector<16x32xf32>
    %337 = arith.mulf %327, %336 : vector<16x32xf32>
    %c26 = arith.constant 26 : index
    %c0_131 = arith.constant 0 : index
    %338 = vector.load %arg3[%c26, %c0_131] : memref<32x128xf32, #tpu.memory_space<vmem>>, vector<1x32xf32>
    %339 = vector.broadcast %338 : vector<1x32xf32> to vector<16x32xf32>
    %340 = arith.mulf %337, %339 : vector<16x32xf32>
    %c27 = arith.constant 27 : index
    %c0_132 = arith.constant 0 : index
    %341 = vector.load %arg3[%c27, %c0_132] : memref<32x128xf32, #tpu.memory_space<vmem>>, vector<1x32xf32>
    %342 = vector.broadcast %341 : vector<1x32xf32> to vector<16x32xf32>
    %343 = arith.addf %340, %342 : vector<16x32xf32>
    %c0_133 = arith.constant 0 : index
    %c0_134 = arith.constant 0 : index
    %c0_135 = arith.constant 0 : index
    %344 = vector.load %arg4[%c0_133, %c0_134, %c0_135] : memref<1x16x32xf32, #tpu.memory_space<vmem>>, vector<1x16x32xf32>
    %345 = vector.shape_cast %344 : vector<1x16x32xf32> to vector<16x32xf32>
    %346 = vector.shape_cast %343 : vector<16x32xf32> to vector<1x16x32xf32>
    tpu.vector_store %arg4[%c0_133, %c0_134, %c0_135], %346 {strides = array<i32>} : memref<1x16x32xf32, #tpu.memory_space<vmem>>, vector<1x16x32xf32>,
    %347 = vector.shape_cast %5 : vector<16x1xf32> to vector<1x16x1xf32>
    %cst_136 = arith.constant dense<0.000000e+00> : vector<1xf32>
    %348 = vector.multi_reduction <add>, %347, %cst_136 [1, 2] : vector<1x16x1xf32> to vector<1xf32>
    %349 = vector.shape_cast %348 : vector<1xf32> to vector<1x1x1xf32>
    %350 = vector.extract %349[0, 0, 0] : f32 from vector<1x1x1xf32>
    %351 = vector.shape_cast %7 : vector<16x1xf32> to vector<1x16x1xf32>
    %cst_137 = arith.constant dense<0.000000e+00> : vector<1xf32>
    %352 = vector.multi_reduction <add>, %351, %cst_137 [1, 2] : vector<1x16x1xf32> to vector<1xf32>
    %353 = vector.shape_cast %352 : vector<1xf32> to vector<1x1x1xf32>
    %354 = vector.extract %353[0, 0, 0] : f32 from vector<1x1x1xf32>
    %355 = vector.broadcast %5 : vector<16x1xf32> to vector<16x32xf32>
    %356 = arith.mulf %343, %355 : vector<16x32xf32>
    %cst_138 = arith.constant dense<0.000000e+00> : vector<32xf32>
    %357 = vector.multi_reduction <add>, %356, %cst_138 [0] : vector<16x32xf32> to vector<32xf32>
    %358 = vector.shape_cast %357 : vector<32xf32> to vector<1x32xf32>
    %359 = arith.mulf %343, %343 : vector<16x32xf32>
    %cst_139 = arith.constant dense<0.000000e+00> : vector<16xf32>
    %360 = vector.multi_reduction <add>, %359, %cst_139 [1] : vector<16x32xf32> to vector<16xf32>
    %361 = vector.shape_cast %360 : vector<16xf32> to vector<16x1xf32>
    %cst_140 = arith.constant 1.000000e-16 : f32
    %362 = vector.broadcast %cst_140 : f32 to vector<16x1xf32>
    %363 = arith.maximumf %361, %362 : vector<16x1xf32>
    %364 = math.rsqrt %363 : vector<16x1xf32>
    %365 = vector.broadcast %364 : vector<16x1xf32> to vector<16x32xf32>
    %366 = arith.mulf %343, %365 : vector<16x32xf32>
    %367 = vector.broadcast %7 : vector<16x1xf32> to vector<16x32xf32>
    %368 = arith.mulf %366, %367 : vector<16x32xf32>
    %cst_141 = arith.constant dense<0.000000e+00> : vector<32xf32>
    %369 = vector.multi_reduction <add>, %368, %cst_141 [0] : vector<16x32xf32> to vector<32xf32>
    %370 = vector.shape_cast %369 : vector<32xf32> to vector<1x32xf32>
    %c0_142 = arith.constant 0 : index
    %c0_143 = arith.constant 0 : index
    %c0_144 = arith.constant 0 : index
    %371 = vector.load %arg5[%c0_142, %c0_143, %c0_144] : memref<1x4x32xf32, #tpu.memory_space<vmem>>, vector<1x1x32xf32>
    %372 = vector.shape_cast %371 : vector<1x1x32xf32> to vector<1x32xf32>
    %373 = vector.shape_cast %358 : vector<1x32xf32> to vector<1x1x32xf32>
    tpu.vector_store %arg5[%c0_142, %c0_143, %c0_144], %373 {strides = array<i32>} : memref<1x4x32xf32, #tpu.memory_space<vmem>>, vector<1x1x32xf32>,
    %c0_145 = arith.constant 0 : index
    %c1_146 = arith.constant 1 : index
    %c0_147 = arith.constant 0 : index
    %374 = vector.load %arg5[%c0_145, %c1_146, %c0_147] : memref<1x4x32xf32, #tpu.memory_space<vmem>>, vector<1x1x32xf32>
    %375 = vector.shape_cast %374 : vector<1x1x32xf32> to vector<1x32xf32>
    %376 = vector.shape_cast %370 : vector<1x32xf32> to vector<1x1x32xf32>
    tpu.vector_store %arg5[%c0_145, %c1_146, %c0_147], %376 {strides = array<i32>} : memref<1x4x32xf32, #tpu.memory_space<vmem>>, vector<1x1x32xf32>,
    %cst_148 = arith.constant 0.000000e+00 : f32
    %377 = vector.broadcast %cst_148 : f32 to vector<1x32xf32>
    %378 = vector.broadcast %350 : f32 to vector<1x32xf32>
    %379 = arith.addf %377, %378 : vector<1x32xf32>
    %c0_149 = arith.constant 0 : index
    %c2_150 = arith.constant 2 : index
    %c0_151 = arith.constant 0 : index
    %380 = vector.load %arg5[%c0_149, %c2_150, %c0_151] : memref<1x4x32xf32, #tpu.memory_space<vmem>>, vector<1x1x32xf32>
    %381 = vector.shape_cast %380 : vector<1x1x32xf32> to vector<1x32xf32>
    %382 = vector.shape_cast %379 : vector<1x32xf32> to vector<1x1x32xf32>
    tpu.vector_store %arg5[%c0_149, %c2_150, %c0_151], %382 {strides = array<i32>} : memref<1x4x32xf32, #tpu.memory_space<vmem>>, vector<1x1x32xf32>,
    %cst_152 = arith.constant 0.000000e+00 : f32
    %383 = vector.broadcast %cst_152 : f32 to vector<1x32xf32>
    %384 = vector.broadcast %354 : f32 to vector<1x32xf32>
    %385 = arith.addf %383, %384 : vector<1x32xf32>
    %c0_153 = arith.constant 0 : index
    %c3_154 = arith.constant 3 : index
    %c0_155 = arith.constant 0 : index
    %386 = vector.load %arg5[%c0_153, %c3_154, %c0_155] : memref<1x4x32xf32, #tpu.memory_space<vmem>>, vector<1x1x32xf32>
    %387 = vector.shape_cast %386 : vector<1x1x32xf32> to vector<1x32xf32>
    %388 = vector.shape_cast %385 : vector<1x32xf32> to vector<1x1x32xf32>
    tpu.vector_store %arg5[%c0_153, %c3_154, %c0_155], %388 {strides = array<i32>} : memref<1x4x32xf32, #tpu.memory_space<vmem>>, vector<1x1x32xf32>,
    return
  }
  func.func @transform_0(%arg0: i32) -> (i32, i32, i32) {
    %c0_i32 = arith.constant 0 : i32
    %c0_i32_0 = arith.constant 0 : i32
    %c0_i32_1 = arith.constant 0 : i32
    return %arg0, %c0_i32, %c0_i32_0 : i32, i32, i32
  }
  func.func @transform_1(%arg0: i32) -> (i32, i32) {
    %c0_i32 = arith.constant 0 : i32
    %c0_i32_0 = arith.constant 0 : i32
    %c0_i32_1 = arith.constant 0 : i32
    return %c0_i32, %c0_i32_0 : i32, i32
  }
  func.func @transform_2(%arg0: i32) -> (i32, i32) {
    %c0_i32 = arith.constant 0 : i32
    %c0_i32_0 = arith.constant 0 : i32
    %c0_i32_1 = arith.constant 0 : i32
    return %c0_i32, %c0_i32_0 : i32, i32
  }
  func.func @transform_3(%arg0: i32) -> (i32, i32, i32) {
    %c0_i32 = arith.constant 0 : i32
    %c0_i32_0 = arith.constant 0 : i32
    %c0_i32_1 = arith.constant 0 : i32
    return %arg0, %c0_i32, %c0_i32_0 : i32, i32, i32
  }
  func.func @transform_4(%arg0: i32) -> (i32, i32, i32) {
    %c0_i32 = arith.constant 0 : i32
    %c0_i32_0 = arith.constant 0 : i32
    %c0_i32_1 = arith.constant 0 : i32
    return %arg0, %c0_i32, %c0_i32_0 : i32, i32, i32
  }
}

</mosaic_0001>

<bundles_post_ra>
// kernel: tpu_custom_call.1
= control target key start
LH: loop header
LB: loop body
LE: loop exit
PB: predicated region body
PF: predicated region fallthrough
CT: control target
= control target key end

     0   :  { %10 = vsyncpa [#allocation3], 0  ;;  %s2829_s0 = inlined_call_operand.hbm [shape: f32[2,16,128], index: 0, kind: input, shape index: {}]   ;;  %s2830_s1 = inlined_call_operand.hbm [shape: bf16[640,128], index: 1, kind: input, shape index: {}]   ;;  %s2831_s2 = inlined_call_operand.hbm [shape: f32[32,128], index: 2, kind: input, shape index: {}]   ;;  %s2832_s3 = inlined_call_operand.hbm [shape: f32[2,16,32], index: 3, kind: output, shape index: {0}]   ;;  %s2833_s4 = inlined_call_operand.hbm [shape: f32[2,4,32], index: 4, kind: output, shape index: {1}]  }
   0x1   :  { %12 = vsyncpa [#allocation3 + $0x1], 0 }
   0x2   :  { %13 = vsyncpa [#allocation6], 0 }
   0x3   :  { %14 = vsyncpa [#allocation4], 0 }
   0x4   :  { %16 = vsyncpa [#allocation4 + $0x1], 0 }
   0x5   :  { %17 = vsyncpa [#allocation10], 0 }
   0x6   :  { %19 = vsyncpa [#allocation10 + $0x1], 0  ;;  %s2486_s15 = smov 0   ;;  %s2488_s16 = smov 0  }
   0x7   :  { %s2490_s17 = smov 0   ;;  %s2492_s18 = smov 0  }
   0x8 LB: > { %s2507_s19 = sadd.s32 4294967295, %s2445_s18   ;;  %s1813_s20 = sadd.s32 4294967294, %s2445_s18   ;;  %s2445_s18 = sphi %s2492_s18, %s2843_s18   ;;  %s2441_s17 = sphi %s2490_s17, %s2842_s17   ;;  %s2437_s16 = sphi %s2488_s16, %s2841_s16   ;;  %s2433_s15 = sphi %s2486_s15, %s2840_s15  }
   0x9   : > { %p45_p0 = scmp.ne.s32.totalorder %s2437_s16, %s2433_s15  ;;  %p46_p1 = scmp.eq.s32.totalorder %s2507_s19, 0 }
   0xa   : > { %p111_p2 = scmp.eq.s32.totalorder %s2507_s19, 1  ;;  %p117_p3 = scmp.eq.s32.totalorder %s1813_s20, 1 }
   0xb   : > { %p2516_p4 = por %p46_p1, %p45_p0  ;;  %p1814_p5 = scmp.ge.s32.totalorder %s2445_s18, 1 }
   0xc   : > { %p2521_p6 = por %p117_p3, %p45_p0  ;;  %p150_p7 = scmp.lt.s32.totalorder %s2445_s18, 3 }
   0xd   : > { %s161_s25 = sshll.u32 %s2830_s1, 4  ;;  %s2447_s27 = smov [#allocation5]   ;;  %s162_s25 = int_to_ptr.hbm [resolvable:$true] %s161_s25 }
   0xe   : > { %p2529_p8 = pnand %p1814_p5, %p150_p7  ;;  %s163_s28 = sshll.u32 %s2447_s27, 4  ;;  %s164_s28 = int_to_ptr.vmem [resolvable:$true] %s163_s28 }
   0xf   : > { %s175_s5 = sshll.u32 %s2831_s2, 4  ;;  %s2448_s6 = smov 64   ;;  %s176_s5 = int_to_ptr.hbm [resolvable:$true] %s175_s5 }
  0x10   : > { %p2082_p9 = pneg %p2529_p8  ;;  %s2449_s7 = smov 4  }
  0x11   : > { %s2450_s8 = smov [#allocation7]   ;;  %s2451_s10 = smov 128  }
  0x12   : > { %p2083_p10 = pnand %p2082_p9, %p46_p1  ;;  %s177_s9 = sshll.u32 %s2450_s8, 4  ;;  %s178_s9 = int_to_ptr.vmem [resolvable:$true] %s177_s9 }
  0x13   : > { %s2452_s11 = smov 8   ;;  %s2545_s12 = sadd.s32 1, %s2445_s18  }
  0x14   : > { %2085 = dma.hbm_to_vmem [thread:$0]  (!%p2083_p10), %s162_s25, 5120, %s164_s28, [#allocation6], %s2448_s6, %s2448_s6, %s2449_s7  }
  0x15   : > { %2088 = dma.hbm_to_vmem [thread:$0]  (!%p2083_p10), %s176_s5, 512, %s178_s9, [#allocation6], %s2451_s10, %s2451_s10, %s2452_s11  }
  0x16   : > { %s29_s13 = ssub.s32 %s2445_s18, %s2545_s12  ;;  %s32_s14 = sadd.s32 1, %s2441_s17 }
  0x17   : > { %p30_p12 = scmp.eq.s32.totalorder %s29_s13, 0  ;;  %p39_p13 = scmp.ne.s32.totalorder %s2441_s17, %s2437_s16 }
  0x18   : > { %p40_p0 = scmp.eq.s32.totalorder %s2445_s18, 0  ;;  %p2102_p7 = scmp.lt.s32.totalorder %s2445_s18, 2 }
  0x19   : > { %s2554_s20 = scalar_select %p30_p12, %s2441_s17, %s32_s14  }
  0x1a   : > { %p41_p3 = por %p40_p0, %p39_p13  ;;  %p2558_p5 = por %p111_p2, %p39_p13 }
  0x1b   : > { %s191_s24 = sand.u32 1, %s2441_s17   ;;  %s2022_s27 = sshll.u32 %s2445_s18, 4 }
  0x1c   : > { %s1818_s25 = sshll.u32 %s191_s24, 4  ;;  %s200_s30 = scalar_lea.hbm %s2829_s0, %s2022_s27 }
  0x1d   : > { %s195_s5 = scalar_lea.vmem [#allocation2], %s1818_s25  ;;  %s201_s7 = sshll.u32 %s200_s30, 4  ;;  %s202_s7 = int_to_ptr.hbm [resolvable:$true] %s201_s7 }
  0x1e   : > { %s203_s6 = sshll.u32 %s195_s5, 4  ;;  %p2568_p9 = pnand %p2102_p7, %p41_p3  ;;  %s204_s6 = int_to_ptr.vmem [resolvable:$true] %s203_s6 }
  0x1f   : > { %s192_s9 = scalar_lea.sflag [#allocation3], %s191_s24  ;;  %s2313_s13 = sshra.s32 %s202_s7, 4  ;;  %s2314_s13 = int_to_ptr.hbm [resolvable:$true] %s2313_s13 }
  0x20   : > { %s2315_s14 = scalar_lea.hbm %s2314_s13, 16  ;;  %p2317_p10 = pneg %p2568_p9 }
  0x21   : > { %p2316_p2 = scmp.ne.s32.totalorder %s2314_s13, %s2315_s14  ;;  %s2320_s28 = scalar_lea.hbm %s2829_s0, 32 }
  0x22   : > { %p2321_p0 = scmp.lt.s32.totalorder %s2314_s13, %s2829_s0  ;;  %p2322_p3 = scmp.lt.s32.totalorder %s2320_s28, %s2315_s14 }
  0x23   : > { %p2318_p12 = pnand %p2317_p10, %p2316_p2 }
  0x24   : > { %p2323_p7 = por %p2322_p3, %p2321_p0 }
  0x25   : > { %p2319_p13 = pneg %p2318_p12 }
  0x27   : > { %p2324_p11 = pnand %p2323_p7, %p2319_p13 }
  0x29   : > { %2327 = shalt.err (!%p2324_p11)
}
  0x2a   : > { %2092 = dma.hbm_to_vmem [thread:$0]  (!%p2568_p9), %s202_s7, 256, %s204_s6, %s192_s9, %s2451_s10, %s2451_s10, %s2452_s11  }
  0x2b   : > { %215 = sbr.rel (%p2529_p8) target bundleno = 4670 (0x123e), region = 32  ;;  %s2588_s24 = sand.u32 (!%p2529_p8), 1, %s2437_s16  }
  0x2c   : > { %s1822_s5 = sshll.u32 (!%p2529_p8), %s2588_s24, 4  ;;  %s218_s13 = scalar_lea.sflag (!%p2529_p8), [#allocation3], %s2588_s24 }
  0x2d   : > { %s2594_s14 = scalar_lea.vmem (!%p2529_p8), [#allocation2], %s1822_s5 }
  0x30   : > { %2416 = dma.done.wait (%p2516_p4), %s218_s13, 256  }
  0x31   : > { %2418 = vsyncadd (%p2516_p4), %s218_s13, 4294967040 }
  0x32   : > { %2420 = dma.done.wait (%p46_p1), [#allocation6], 5632  }
  0x33   : > { %2422 = vsyncadd (%p46_p1), [#allocation6], 4294961664  ;;  %vm265_vm0 = vcmask 261120   ;;  %v2605_v0 = vld [vmem:[%s2594_s14] sm:$0xff]  ;;  %v2608_v1 = vld [vmem:[%s2594_s14 + $0x8] sm:$0xff]  ;;  %v2453_v4 = vmov 32.0  }
  0x34   : > { %v266_v2 = vsel %vm265_vm0, %v2605_v0, 0.0  ;;  %v269_v3 = vsel %vm265_vm0, %v2608_v1, 0.0  ;;  %2185 = vrcp.f32 %v2453_v4  ;;  %v2024_v21 = vld [vmem:[#allocation5 + $0x8] sm:$0xff]  ;;  %v2026_v22 = vld [vmem:[#allocation5 + $0x18] sm:$0xff]  ;;  %v2023_v26 = vld [vmem:[#allocation5] sm:$0xff]  ;;  %s2454_s21 = smov 96  }
  0x35   : > { %267 = vadd.xlane.f32.xlu0 %v266_v2  ;;  %v2028_v23 = vld [vmem:[#allocation5 + $0x28] sm:$0xff]  ;;  %353 = vmatpush.bf16.msra.mxu0 %v2024_v21  ;;  %v2025_v27 = vld [vmem:[#allocation5 + $0x10] sm:$0xff]  ;;  %v2027_v28 = vld [vmem:[#allocation5 + $0x20] sm:$0xff]  ;;  %vm427_vm8 = vcmask 130048   ;;  %vm863_vm15 = vcmask 523264   ;;  %s2455_s26 = smov 80  }
  0x36   : > { %385 = vmatpush.bf16.msra.mxu1 %v2026_v22  ;;  %417 = vmatpush.bf16.msra.mxu2 %v2028_v23  ;;  %v2031_v31 = vld [vmem:[#allocation5 + $0x38] sm:$0xff]  ;;  %v2033_v32 = vld [vmem:[#allocation5 + $0x48] sm:$0xff]  ;;  %v2030_v34 = vld [vmem:[#allocation5 + $0x30] sm:$0xff]  ;;  %s2456_s10 = smov 79   ;;  %s254_s11 = scalar_lea.vmem [#allocation8], %s1822_s5 }
  0x37   : > { %v2032_v35 = vld [vmem:[#allocation5 + $0x40] sm:$0xff]  ;;  %452 = vrot.lane.b32.xlu2 %v2605_v0, %s2454_s21  ;;  %s2063_s6 = sshll.u32 %s2507_s19, 4  ;;  %s1671_s27 = sshll.u32 %s254_s11, 4  ;;  %s1672_s27 = int_to_ptr.vmem [resolvable:$true] %s1671_s27 }
  0x38   : > { %v2157_v49 = vld [vmem:[#allocation7] ss:$0 sm:$0xff]  ;;  %v2158_v53 = vld [vmem:[#allocation7 + $0x1] ss:$0 sm:$0xff]  ;;  %v2160_v62 = vld [vmem:[#allocation7 + $0x3] ss:$0 sm:$0xff]  ;;  %s1670_s9 = scalar_lea.hbm %s2832_s3, %s2063_s6 }
  0x39   : > { %354 = vmatpush.bf16.msra.mxu0 %v2023_v26  ;;  %s1673_s25 = sshll.u32 %s1670_s9, 4  ;;  %s1654_s28 = scalar_lea.sflag [#allocation4], %s2588_s24  ;;  %s1674_s25 = int_to_ptr.hbm [resolvable:$true] %s1673_s25 }
  0x3a   : > { %v2186_v5 = vpop.eup %2185  ;;  %386 = vmatpush.bf16.msra.mxu1 %v2025_v27  ;;  %418 = vmatpush.bf16.msra.mxu2 %v2027_v28  ;;  %s2357_s29 = sshra.s32 %s1674_s25, 4  ;;  %s2358_s29 = int_to_ptr.hbm [resolvable:$true] %s2357_s29 }
  0x3b   : > { %v273_v6 = vmul.f32 32.0, %v2186_v5  ;;  %vm277_vm1 = vweird.f32 %v2186_v5  ;;  %s2359_s30 = scalar_lea.hbm %s2358_s29, 16  ;;  %p2364_p11 = scmp.lt.s32.totalorder %s2358_s29, %s2832_s3 }
  0x3c   : > { %p2360_p1 = scmp.ne.s32.totalorder %s2358_s29, %s2359_s30 }
  0x3d   : > { %270 = vadd.xlane.f32.xlu0 %v269_v3  ;;  %v274_v7 = vsub.f32 1.0, %v273_v6  ;;  %v2035_v6 = vld [vmem:[#allocation5 + $0x58] sm:$0xff] }
  0x3e   : > { %528 = vmatpush.bf16.msrb.mxu1 %v2031_v31  ;;  %560 = vmatpush.bf16.msrb.mxu2 %v2033_v32  ;;  %p2361_p4 = pnand %p2360_p1, %p2558_p5 }
  0x3f   : > { %v275_v8 = vmul.f32 %v2186_v5, %v274_v7  ;;  %454 = vrot.lane.b32.xlu2 %v2608_v1, %s2454_s21  ;;  %v2161_v7 = vld [vmem:[#allocation7 + $0x4] ss:$0 sm:$0xff] }
  0x40   : > { %p2362_p8 = pneg %p2361_p4 }
  0x41   : > { %v276_v9 = vadd.f32 %v2186_v5, %v275_v8 }
  0x42   : > { %529 = vmatpush.bf16.msrb.mxu1 %v2030_v34  ;;  %561 = vmatpush.bf16.msrb.mxu2 %v2032_v35 }
  0x43   : > { %v2614_v10 = vsel %vm277_vm1, %v2186_v5, %v276_v9  ;;  %v2159_v9 = vld [vmem:[#allocation7 + $0x2] ss:$0 sm:$0xff] }
  0xa8   : > { %v268_v11 = vpop.xlane.xlu0 %267 }
  0xa9   : > { %v279_v12 = vmul.f32 %v2614_v10, %v268_v11 }
  0xab   : > { %v281_v13 = vsub.f32 %v2605_v0, %v279_v12 }
  0xad   : > { %v283_v14 = vmul.f32 %v281_v13, %v281_v13 }
  0xaf   : > { %v285_v15 = vsel %vm265_vm0, %v283_v14, 0.0 }
  0xb0   : > { %286 = vadd.xlane.f32.xlu1 %v285_v15  ;;  %v271_v16 = vpop.xlane.xlu0 %270 }
  0xb1   : > { %v280_v17 = vmul.f32 %v2614_v10, %v271_v16 }
  0xb3   : > { %v282_v18 = vsub.f32 %v2608_v1, %v280_v17  ;;  %v2034_v1 = vld [vmem:[#allocation5 + $0x50] sm:$0xff] }
  0xb5   : > { %v284_v19 = vmul.f32 %v282_v18, %v282_v18 }
  0xb7   : > { %v288_v20 = vsel %vm265_vm0, %v284_v19, 0.0  ;;  %v2163_v19 = vld [vmem:[#allocation7 + $0x6] ss:$0 sm:$0xff] }
  0xb8   : > { %289 = vadd.xlane.f32.xlu1 %v288_v20 }
 0x123   : > { %v287_v24 = vpop.xlane.xlu1 %286 }
 0x124   : > { %v291_v25 = vmul.f32 %v287_v24, %v2614_v10 }
 0x126   : > { %v293_v29 = vadd.f32 1e-12, %v291_v25  ;;  %v2641_v25 = vpop.permute.xlu2 %452 }
 0x128   : > { %2187 = vrsqrt.f32 %v293_v29  ;;  %vm301_vm3 = vweird.f32 %v293_v29 }
 0x12b   : > { %v290_v30 = vpop.xlane.xlu1 %289 }
 0x12c   : > { %v292_v33 = vmul.f32 %v290_v30, %v2614_v10 }
 0x12e   : > { %v2188_v36 = vpop.eup %2187  ;;  %v294_v37 = vadd.f32 1e-12, %v292_v33  ;;  %v2645_v31 = vpop.permute.xlu2 %454 }
 0x12f   : > { %v296_v38 = vmul.f32 %v2188_v36, %v293_v29  ;;  %vm302_vm2 = vweird.f32 %v2188_v36 }
 0x130   : > { %2189 = vrsqrt.f32 %v294_v37  ;;  %vm303_vm4 = vmor %vm301_vm3, %vm302_vm2  ;;  %vm311_vm6 = vweird.f32 %v294_v37 }
 0x131   : > { %v297_v39 = vmul.f32 %v2188_v36, %v296_v38 }
 0x133   : > { %v298_v40 = vmul.f32 0.5, %v297_v39 }
 0x135   : > { %v299_v41 = vsub.f32 1.5, %v298_v40 }
 0x136   : > { %v2190_v42 = vpop.eup %2189 }
 0x137   : > { %v300_v43 = vmul.f32 %v2188_v36, %v299_v41  ;;  %v306_v44 = vmul.f32 %v2190_v42, %v294_v37  ;;  %vm312_vm5 = vweird.f32 %v2190_v42 }
 0x138   : > { %vm313_vm7 = vmor %vm311_vm6, %vm312_vm5 }
 0x139   : > { %v307_v45 = vmul.f32 %v2190_v42, %v306_v44  ;;  %v304_v46 = vsel %vm303_vm4, %v2188_v36, %v300_v43  ;;  %v2164_v36 = vld [vmem:[#allocation7 + $0x7] ss:$0 sm:$0xff] }
 0x13a   : > { %v315_v50 = vmul.f32 %v304_v46, %v281_v13 }
 0x13b   : > { %v308_v47 = vmul.f32 0.5, %v307_v45 }
 0x13c   : > { %v319_v54 = vmul.f32 %v2157_v49, %v315_v50 }
 0x13d   : > { %v309_v48 = vsub.f32 1.5, %v308_v47 }
 0x13e   : > { %v2624_v57 = vadd.f32 %v2158_v53, %v319_v54 }
 0x13f   : > { %v310_v51 = vmul.f32 %v2190_v42, %v309_v48 }
 0x141   : > { %v314_v52 = vsel %vm313_vm7, %v2190_v42, %v310_v51 }
 0x142   : > { %v316_v55 = vmul.f32 %v314_v52, %v282_v18 }
 0x144   : > { %v320_v56 = vmul.f32 %v2157_v49, %v316_v55 }
 0x146   : > { %v2626_v58 = vadd.f32 %v2158_v53, %v320_v56 }
 0x148   : > { %v329_v59 = vpack.c.bf16 %v2626_v58, %v2624_v57 }
 0x14a   : > { %1835 = vmatmul.msk.bf16.vlgmr.msra.gmra.mxu0 %vm265_vm0, %v329_v59  ;;  %1844 = vmatmul.msk.bf16.vlgmr.msra.gmra.mxu1 %vm265_vm0, %v329_v59 }
 0x14b   : > { %1853 = vmatmul.msk.bf16.vlgmr.msra.gmra.mxu2 %vm265_vm0, %v329_v59 }
 0x15a   : > { %1864 = vmatmul.msk.bf16.vlgmr.msrb.gmra.mxu1 %vm265_vm0, %v329_v59 }
 0x15b   : > { %1873 = vmatmul.msk.bf16.vlgmr.msrb.gmra.mxu2 %vm265_vm0, %v329_v59 }
 0x1c7   : > { %v388_v60 = vpop.f32.mrf.mxu1  ;;  %v356_v61 = vpop.f32.mrf.mxu0 }
 0x1c8   : > { %v389_v3 = vadd.f32 %v2160_v62, %v388_v60  ;;  %v357_v15 = vadd.f32 %v2159_v9, %v356_v61 }
 0x1ce   : > { %v420_v63 = vpop.f32.mrf.mxu2 }
 0x1cf   : > { %v390_v2 = vpop.f32.mrf.mxu1  ;;  %v358_v8 = vpop.f32.mrf.mxu0  ;;  %v421_v13 = vadd.f32 %v2161_v7, %v420_v63 }
 0x1d0   : > { %v391_v4 = vadd.f32 %v2160_v62, %v390_v2  ;;  %v359_v12 = vadd.f32 %v2159_v9, %v358_v8  ;;  %v2162_v62 = vld [vmem:[#allocation7 + $0x5] ss:$0 sm:$0xff] }
 0x1d2   : > { %v426_v5 = vpack.c.bf16 %v391_v4, %v389_v3  ;;  %v425_v17 = vpack.c.bf16 %v359_v12, %v357_v15  ;;  %v2029_v4 = vld [vmem:[#allocation5 + $0x60] sm:$0xff] }
 0x1d4   : > { %v432_v11 = vsel %vm427_vm8, %v426_v5, 0 }
 0x1d5   : > { %441 = vmatpush.bf16.xpose.msra.mxu3 %v432_v11 }
 0x1d6   : > { %v422_v0 = vpop.f32.mrf.mxu2 }
 0x1d7   : > { %v423_v14 = vadd.f32 %v2161_v7, %v422_v0 }
 0x1d9   : > { %v483_v16 = vpack.c.bf16 %v423_v14, %v421_v13 }
 0x1db   : > { %494 = vmatpush.bf16.msrb.mxu0 %v483_v16 }
 0x1dc   : > { %1854 = vmatmul.msk.bf16.vlgmr.msra.gmra.mxu3 %vm427_vm8, %v425_v17 }
 0x1dd   : > { %592 = vmatpush.bf16.msrb.mxu3 %v2035_v6 }
 0x1de   : > { %v563_v18 = vpop.f32.mrf.mxu2 }
 0x1df   : > { %v564_v21 = vadd.f32 %v2163_v19, %v563_v18 }
 0x1e1   : > { %593 = vmatpush.bf16.msrb.mxu3 %v2034_v1 }
 0x1e5   : > { %709 = vmatpush.bf16.msra.mxu3 %v2029_v4 }
 0x1e6   : > { %v565_v20 = vpop.f32.mrf.mxu2 }
 0x1e7   : > { %v566_v22 = vadd.f32 %v2163_v19, %v565_v20 }
 0x1e9   : > { %v601_v23 = vpack.c.bf16 %v566_v22, %v564_v21 }
 0x1eb   : > { %v606_v24 = vsel %vm427_vm8, %v601_v23, 0 }
 0x1ec   : > { %615 = vmatpush.bf16.xpose.msra.mxu0 %v606_v24  ;;  %1882 = vmatmul.msk.bf16.vlgmr.msrb.gmra.mxu3 %vm265_vm0, %v329_v59  ;;  %v531_v59 = vpop.f32.mrf.mxu1 }
 0x1ed   : > { %v532_v2 = vadd.f32 %v2162_v62, %v531_v59 }
 0x1f4   : > { %v533_v61 = vpop.f32.mrf.mxu1 }
 0x1f5   : > { %v534_v63 = vadd.f32 %v2162_v62, %v533_v61 }
 0x1f7   : > { %v600_v3 = vpack.c.bf16 %v534_v63, %v532_v2 }
 0x25f   : > { %v443_v26 = vpop.f32.mrf.mxu3 }
 0x260   : > { %v448_v27 = vmul.f32 0.25, %v443_v26 }
 0x262   : > { %v458_v28 = vadd.f32 %v2641_v25, %v448_v27 }
 0x264   : > { %v460_v29 = vsel %vm427_vm8, %v458_v28, -inf }
 0x265   : > { %461 = vmax.xlane.f32.xlu0 %v460_v29 }
 0x267   : > { %v445_v30 = vpop.f32.mrf.mxu3 }
 0x268   : > { %v449_v32 = vmul.f32 0.25, %v445_v30 }
 0x26a   : > { %v459_v33 = vadd.f32 %v2645_v31, %v449_v32 }
 0x26c   : > { %v463_v34 = vsel %vm427_vm8, %v459_v33, -inf }
 0x26d   : > { %464 = vmax.xlane.f32.xlu1 %v463_v34  ;;  %v2036_v34 = vld [vmem:[#allocation5 + $0x68] sm:$0xff] }
 0x26e   : > { %686 = vmatpush.bf16.msra.mxu2 %v2036_v34  ;;  %v2039_v34 = vld [vmem:[#allocation5 + $0x80] sm:$0xff] }
 0x26f   : > { %v595_v35 = vpop.f32.mrf.mxu3 }
 0x270   : > { %v596_v38 = vadd.f32 %v2164_v36, %v595_v35 }
 0x277   : > { %v597_v37 = vpop.f32.mrf.mxu3 }
 0x278   : > { %v598_v39 = vadd.f32 %v2164_v36, %v597_v37 }
 0x27a   : > { %v649_v40 = vpack.c.bf16 %v598_v39, %v596_v38  ;;  %v2165_v39 = vld [vmem:[#allocation7 + $0x8] ss:$0 sm:$0xff] }
 0x27c   : > { %660 = vmatpush.bf16.msra.mxu1 %v649_v40 }
 0x2d8   : > { %v462_v41 = vpop.xlane.xlu0 %461 }
 0x2d9   : > { %v466_v42 = vsub.f32 %v458_v28, %v462_v41 }
 0x2db   : > { %v468_v43 = vmul.f32 1.442695, %v466_v42 }
 0x2dd   : > { %2191 = vpow2.f32 %v468_v43 }
 0x2e0   : > { %v465_v44 = vpop.xlane.xlu1 %464 }
 0x2e1   : > { %v467_v45 = vsub.f32 %v459_v33, %v465_v44 }
 0x2e3   : > { %v2192_v46 = vpop.eup %2191  ;;  %v470_v47 = vmul.f32 1.442695, %v467_v45 }
 0x2e4   : > { %v472_v48 = vsel %vm427_vm8, %v2192_v46, 0.0 }
 0x2e5   : > { %2193 = vpow2.f32 %v470_v47  ;;  %473 = vadd.xlane.f32.xlu2 %v472_v48 }
 0x2eb   : > { %v2194_v49 = vpop.eup %2193 }
 0x2ec   : > { %v475_v50 = vsel %vm427_vm8, %v2194_v49, 0.0 }
 0x2ed   : > { %476 = vadd.xlane.f32.xlu0 %v475_v50 }
 0x358   : > { %v474_v51 = vpop.xlane.xlu2 %473 }
 0x359   : > { %2195 = vrcp.f32 %v474_v51 }
 0x35f   : > { %v2196_v53 = vpop.eup %2195 }
 0x360   : > { %v477_v52 = vpop.xlane.xlu0 %476  ;;  %v480_v55 = vmul.f32 %v2196_v53, %v2192_v46 }
 0x361   : > { %2197 = vrcp.f32 %v477_v52 }
 0x367   : > { %v2198_v54 = vpop.eup %2197 }
 0x368   : > { %v481_v56 = vmul.f32 %v2198_v54, %v2194_v49 }
 0x36a   : > { %v482_v60 = vpack.c.bf16 %v481_v56, %v480_v55 }
 0x36c   : > { %1855 = vmatmul.msk.bf16.vlgmr.msrb.gmra.mxu0 %vm427_vm8, %v482_v60 }
 0x37c   : > { %1883 = vmatmul.msk.bf16.vlgmr.msra.gmra.mxu0 %vm427_vm8, %v600_v3  ;;  %v2037_v3 = vld [vmem:[#allocation5 + $0x70] sm:$0xff] }
 0x3e9   : > { %v496_v5 = vpop.f32.mrf.mxu0 }
 0x3f1   : > { %v498_v6 = vpop.f32.mrf.mxu0 }
 0x3f2   : > { %v503_v7 = vpack.c.bf16 %v498_v6, %v496_v5 }
 0x3f4   : > { %1894 = vmatmul.msk.bf16.vlgmr.msra.gmra.mxu3 %vm427_vm8, %v503_v7 }
 0x3f9   : > { %v617_v8 = vpop.f32.mrf.mxu0 }
 0x3fa   : > { %v622_v9 = vmul.f32 0.25, %v617_v8 }
 0x3fc   : > { %v624_v11 = vadd.f32 %v622_v9, %v2641_v25 }
 0x3fe   : > { %v626_v12 = vsel %vm427_vm8, %v624_v11, -inf }
 0x3ff   : > { %627 = vmax.xlane.f32.xlu1 %v626_v12 }
 0x401   : > { %v619_v0 = vpop.f32.mrf.mxu0 }
 0x402   : > { %v623_v1 = vmul.f32 0.25, %v619_v0 }
 0x404   : > { %v625_v13 = vadd.f32 %v623_v1, %v2645_v31 }
 0x406   : > { %v629_v14 = vsel %vm427_vm8, %v625_v13, -inf }
 0x407   : > { %630 = vmax.xlane.f32.xlu0 %v629_v14 }
 0x472   : > { %v628_v15 = vpop.xlane.xlu1 %627 }
 0x473   : > { %v632_v16 = vsub.f32 %v624_v11, %v628_v15 }
 0x475   : > { %v634_v17 = vmul.f32 1.442695, %v632_v16 }
 0x477   : > { %2199 = vpow2.f32 %v634_v17  ;;  %v711_v38 = vpop.f32.mrf.mxu3 }
 0x47a   : > { %v631_v18 = vpop.xlane.xlu0 %630 }
 0x47b   : > { %v633_v19 = vsub.f32 %v625_v13, %v631_v18  ;;  %v2166_v18 = vld [vmem:[#allocation7 + $0x9] ss:$0 sm:$0xff] }
 0x47d   : > { %v2200_v20 = vpop.eup %2199  ;;  %v636_v21 = vmul.f32 1.442695, %v633_v19 }
 0x47e   : > { %v638_v22 = vsel %vm427_vm8, %v2200_v20, 0.0 }
 0x47f   : > { %2201 = vpow2.f32 %v636_v21  ;;  %639 = vadd.xlane.f32.xlu1 %v638_v22  ;;  %v713_v45 = vpop.f32.mrf.mxu3  ;;  %v2167_v22 = vld [vmem:[#allocation7 + $0xa] ss:$0 sm:$0xff] }
 0x485   : > { %v2202_v23 = vpop.eup %2201 }
 0x486   : > { %v641_v24 = vsel %vm427_vm8, %v2202_v23, 0.0 }
 0x487   : > { %642 = vadd.xlane.f32.xlu0 %v641_v24 }
 0x4f2   : > { %v640_v26 = vpop.xlane.xlu1 %639 }
 0x4f3   : > { %2203 = vrcp.f32 %v640_v26 }
 0x4f9   : > { %v2204_v28 = vpop.eup %2203 }
 0x4fa   : > { %v643_v27 = vpop.xlane.xlu0 %642  ;;  %v646_v30 = vmul.f32 %v2204_v28, %v2200_v20 }
 0x4fb   : > { %2205 = vrcp.f32 %v643_v27 }
 0x501   : > { %v2206_v29 = vpop.eup %2205 }
 0x502   : > { %v647_v32 = vmul.f32 %v2206_v29, %v2202_v23 }
 0x504   : > { %v648_v33 = vpack.c.bf16 %v647_v32, %v646_v30  ;;  %v2042_v30 = vld [vmem:[#allocation5 + $0x98] sm:$0xff]  ;;  %v2041_v32 = vld [vmem:[#allocation5 + $0x90] sm:$0xff] }
 0x505   : > { %871 = vmatpush.bf16.msrb.mxu1 %v2042_v30  ;;  %v2052_v30 = vld [vmem:[#allocation5 + $0xe0] sm:$0xff] }
 0x506   : > { %1884 = vmatmul.msk.bf16.vlgmr.msra.gmra.mxu1 %vm427_vm8, %v648_v33  ;;  %v2040_v33 = vld [vmem:[#allocation5 + $0x88] sm:$0xff] }
 0x509   : > { %872 = vmatpush.bf16.msrb.mxu1 %v2041_v32 }
 0x50d   : > { %873 = vmatpush.bf16.msrb.mxu1 %v2040_v33 }
 0x511   : > { %874 = vmatpush.bf16.msrb.mxu1 %v2039_v34 }
 0x583   : > { %v662_v35 = vpop.f32.mrf.mxu1 }
 0x58b   : > { %v664_v36 = vpop.f32.mrf.mxu1 }
 0x58c   : > { %v669_v37 = vpack.c.bf16 %v664_v36, %v662_v35  ;;  %v2168_v35 = vld [vmem:[#allocation7 + $0xb] ss:$0 sm:$0xff] }
 0x58e   : > { %1889 = vmatmul.msk.bf16.vlgmr.msra.gmra.mxu2 %vm427_vm8, %v669_v37 }
 0x611   : > { %v688_v40 = vpop.f32.mrf.mxu2 }
 0x612   : > { %v712_v41 = vadd.f32 %v711_v38, %v688_v40 }
 0x614   : > { %v718_v42 = vadd.f32 %v2165_v39, %v712_v41 }
 0x616   : > { %v720_v43 = vadd.f32 %v718_v42, %v2624_v57 }
 0x618   : > { %v722_v44 = vsel %vm265_vm0, %v720_v43, 0.0 }
 0x619   : > { %v690_v46 = vpop.f32.mrf.mxu2  ;;  %723 = vadd.xlane.f32.xlu1 %v722_v44 }
 0x61a   : > { %v714_v47 = vadd.f32 %v713_v45, %v690_v46 }
 0x61c   : > { %v719_v48 = vadd.f32 %v2165_v39, %v714_v47 }
 0x61e   : > { %v721_v49 = vadd.f32 %v719_v48, %v2626_v58  ;;  %v2038_v58 = vld [vmem:[#allocation5 + $0x78] sm:$0xff] }
 0x61f   : > { %802 = vmatpush.bf16.msrb.mxu0 %v2038_v58 }
 0x620   : > { %v725_v50 = vsel %vm265_vm0, %v721_v49, 0.0 }
 0x621   : > { %726 = vadd.xlane.f32.xlu0 %v725_v50 }
 0x623   : > { %803 = vmatpush.bf16.msrb.mxu0 %v2037_v3 }
 0x68c   : > { %v724_v51 = vpop.xlane.xlu1 %723 }
 0x68d   : > { %v728_v52 = vmul.f32 %v724_v51, %v2614_v10 }
 0x68f   : > { %v730_v53 = vsub.f32 %v720_v43, %v728_v52 }
 0x691   : > { %v732_v54 = vmul.f32 %v730_v53, %v730_v53 }
 0x693   : > { %v734_v55 = vsel %vm265_vm0, %v732_v54, 0.0 }
 0x694   : > { %v727_v57 = vpop.xlane.xlu0 %726  ;;  %735 = vadd.xlane.f32.xlu1 %v734_v55 }
 0x695   : > { %v729_v56 = vmul.f32 %v727_v57, %v2614_v10 }
 0x697   : > { %v731_v59 = vsub.f32 %v721_v49, %v729_v56 }
 0x699   : > { %v733_v60 = vmul.f32 %v731_v59, %v731_v59 }
 0x69b   : > { %v737_v61 = vsel %vm265_vm0, %v733_v60, 0.0  ;;  %v2169_v60 = vld [vmem:[#allocation7 + $0xc] ss:$0 sm:$0xff] }
 0x69c   : > { %738 = vadd.xlane.f32.xlu0 %v737_v61 }
 0x707   : > { %v736_v62 = vpop.xlane.xlu1 %735 }
 0x708   : > { %v740_v63 = vmul.f32 %v736_v62, %v2614_v10 }
 0x70a   : > { %v742_v2 = vadd.f32 1e-12, %v740_v63 }
 0x70c   : > { %2207 = vrsqrt.f32 %v742_v2  ;;  %vm750_vm10 = vweird.f32 %v742_v2 }
 0x70f   : > { %v739_v4 = vpop.xlane.xlu0 %738 }
 0x710   : > { %v741_v5 = vmul.f32 %v739_v4, %v2614_v10 }
 0x712   : > { %v2208_v6 = vpop.eup %2207  ;;  %v743_v7 = vadd.f32 1e-12, %v741_v5 }
 0x713   : > { %v745_v8 = vmul.f32 %v2208_v6, %v742_v2  ;;  %vm751_vm9 = vweird.f32 %v2208_v6 }
 0x714   : > { %2209 = vrsqrt.f32 %v743_v7  ;;  %vm752_vm11 = vmor %vm750_vm10, %vm751_vm9  ;;  %vm760_vm13 = vweird.f32 %v743_v7 }
 0x715   : > { %v746_v9 = vmul.f32 %v2208_v6, %v745_v8 }
 0x717   : > { %v747_v11 = vmul.f32 0.5, %v746_v9 }
 0x719   : > { %v748_v12 = vsub.f32 1.5, %v747_v11 }
 0x71a   : > { %v2210_v0 = vpop.eup %2209 }
 0x71b   : > { %v749_v1 = vmul.f32 %v2208_v6, %v748_v12  ;;  %v755_v13 = vmul.f32 %v2210_v0, %v743_v7  ;;  %vm761_vm12 = vweird.f32 %v2210_v0 }
 0x71c   : > { %vm762_vm14 = vmor %vm760_vm13, %vm761_vm12  ;;  %vm1543_vm13 = vcmask 7168  }
 0x71d   : > { %v756_v14 = vmul.f32 %v2210_v0, %v755_v13  ;;  %v753_v15 = vsel %vm752_vm11, %v2208_v6, %v749_v1 }
 0x71e   : > { %v764_v19 = vmul.f32 %v753_v15, %v730_v53  ;;  %v2044_v15 = vld [vmem:[#allocation5 + $0xa8] sm:$0xff] }
 0x71f   : > { %v757_v16 = vmul.f32 0.5, %v756_v14  ;;  %963 = vmatpush.bf16.msrb.mxu2 %v2044_v15 }
 0x720   : > { %v768_v23 = vmul.f32 %v2166_v18, %v764_v19 }
 0x721   : > { %v758_v17 = vsub.f32 1.5, %v757_v16  ;;  %v2046_v16 = vld [vmem:[#allocation5 + $0xb8] sm:$0xff] }
 0x722   : > { %v772_v27 = vadd.f32 %v2167_v22, %v768_v23  ;;  %995 = vmatpush.bf16.msrb.mxu3 %v2046_v16  ;;  %v2047_v23 = vld [vmem:[#allocation5 + $0xc0] sm:$0xff] }
 0x723   : > { %v759_v20 = vmul.f32 %v2210_v0, %v758_v17  ;;  %v2048_v17 = vld [vmem:[#allocation5 + $0xc8] sm:$0xff] }
 0x724   : > { %1027 = vmatpush.bf16.msra.mxu0 %v2048_v17 }
 0x725   : > { %v763_v21 = vsel %vm762_vm14, %v2210_v0, %v759_v20 }
 0x726   : > { %v765_v24 = vmul.f32 %v763_v21, %v731_v59  ;;  %v2043_v21 = vld [vmem:[#allocation5 + $0xa0] sm:$0xff] }
 0x727   : > { %964 = vmatpush.bf16.msrb.mxu2 %v2043_v21 }
 0x728   : > { %v769_v26 = vmul.f32 %v2166_v18, %v765_v24  ;;  %1028 = vmatpush.bf16.msra.mxu0 %v2047_v23 }
 0x72a   : > { %v773_v28 = vadd.f32 %v2167_v22, %v769_v26  ;;  %v2045_v22 = vld [vmem:[#allocation5 + $0xb0] sm:$0xff]  ;;  %v2051_v26 = vld [vmem:[#allocation5 + $0xd8] sm:$0xff] }
 0x72b   : > { %996 = vmatpush.bf16.msrb.mxu3 %v2045_v22 }
 0x72c   : > { %v778_v29 = vpack.c.bf16 %v773_v28, %v772_v27 }
 0x72e   : > { %1903 = vmatmul.msk.bf16.vlgmr.msrb.gmra.mxu0 %vm265_vm0, %v778_v29  ;;  %v2050_v29 = vld [vmem:[#allocation5 + $0xd0] sm:$0xff] }
 0x72f   : > { %1129 = vmatpush.bf16.msra.mxu3 %v2051_v26 }
 0x733   : > { %1130 = vmatpush.bf16.msra.mxu3 %v2050_v29 }
 0x7ab   : > { %v805_v36 = vpop.f32.mrf.mxu0 }
 0x7ac   : > { %v806_v37 = vadd.f32 %v2168_v35, %v805_v36 }
 0x7ae   : > { %v812_v38 = vmul.f32 0.044715, %v806_v37  ;;  %v810_v53 = vmul.f32 0.5, %v806_v37 }
 0x7b0   : > { %v814_v39 = vmul.f32 %v812_v38, %v806_v37 }
 0x7b2   : > { %v816_v40 = vmul.f32 %v814_v39, %v806_v37 }
 0x7b3   : > { %v807_v41 = vpop.f32.mrf.mxu0 }
 0x7b4   : > { %v818_v42 = vadd.f32 %v816_v40, %v806_v37  ;;  %v808_v43 = vadd.f32 %v2168_v35, %v807_v41 }
 0x7b6   : > { %v813_v44 = vmul.f32 0.044715, %v808_v43  ;;  %v820_v45 = vmul.f32 0.7978846, %v818_v42  ;;  %v811_v54 = vmul.f32 0.5, %v808_v43 }
 0x7b8   : > { %v815_v46 = vmul.f32 %v813_v44, %v808_v43  ;;  %2211 = vtanh.f32 %v820_v45  ;;  %v2170_v45 = vld [vmem:[#allocation7 + $0xd] ss:$0 sm:$0xff] }
 0x7ba   : > { %v817_v47 = vmul.f32 %v815_v46, %v808_v43 }
 0x7bc   : > { %v819_v48 = vadd.f32 %v817_v47, %v808_v43 }
 0x7be   : > { %v821_v49 = vmul.f32 0.7978846, %v819_v48  ;;  %v2212_v50 = vpop.eup %2211 }
 0x7bf   : > { %v824_v51 = vadd.f32 1.0, %v2212_v50 }
 0x7c0   : > { %2213 = vtanh.f32 %v821_v49  ;;  %v2171_v49 = vld [vmem:[#allocation7 + $0xe] ss:$0 sm:$0xff] }
 0x7c1   : > { %v826_v57 = vmul.f32 %v824_v51, %v810_v53 }
 0x7c6   : > { %v2214_v52 = vpop.eup %2213 }
 0x7c7   : > { %v825_v55 = vadd.f32 1.0, %v2214_v52 }
 0x7c9   : > { %v827_v56 = vmul.f32 %v825_v55, %v811_v54 }
 0x7cb   : > { %v836_v59 = vpack.c.bf16 %v827_v56, %v826_v57  ;;  %v2172_v56 = vld [vmem:[#allocation7 + $0x11] ss:$0 sm:$0xff] }
 0x7cd   : > { %1920 = vmatmul.msk.bf16.vlgmr.msrb.gmra.mxu1 %vm863_vm15, %v836_v59 }
 0x84a   : > { %v876_v61 = vpop.f32.mrf.mxu1 }
 0x84b   : > { %v877_v58 = vadd.f32 %v2169_v60, %v876_v61 }
 0x84d   : > { %v881_v62 = vadd.f32 %v877_v58, %v772_v27  ;;  %v2053_v27 = vld [vmem:[#allocation5 + $0xe8] sm:$0xff] }
 0x84e   : > { %1161 = vmatpush.bf16.msrb.mxu0 %v2053_v27 }
 0x84f   : > { %v883_v63 = vsel %vm265_vm0, %v881_v62, 0.0 }
 0x850   : > { %884 = vadd.xlane.f32.xlu1 %v883_v63  ;;  %v2174_v63 = vld [vmem:[#allocation7 + $0x10] ss:$0 sm:$0xff] }
 0x852   : > { %v878_v2 = vpop.f32.mrf.mxu1  ;;  %1162 = vmatpush.bf16.msrb.mxu0 %v2052_v30 }
 0x853   : > { %v879_v3 = vadd.f32 %v2169_v60, %v878_v2 }
 0x855   : > { %v882_v4 = vadd.f32 %v879_v3, %v773_v28 }
 0x857   : > { %v886_v5 = vsel %vm265_vm0, %v882_v4, 0.0 }
 0x858   : > { %887 = vadd.xlane.f32.xlu2 %v886_v5 }
 0x8c3   : > { %v885_v6 = vpop.xlane.xlu1 %884 }
 0x8c4   : > { %v889_v7 = vmul.f32 %v885_v6, %v2614_v10 }
 0x8c6   : > { %v891_v8 = vsub.f32 %v881_v62, %v889_v7 }
 0x8c8   : > { %v893_v9 = vmul.f32 %v891_v8, %v891_v8 }
 0x8ca   : > { %v895_v11 = vsel %vm265_vm0, %v893_v9, 0.0 }
 0x8cb   : > { %v888_v12 = vpop.xlane.xlu2 %887  ;;  %896 = vadd.xlane.f32.xlu0 %v895_v11  ;;  %v2173_v11 = vld [vmem:[#allocation7 + $0xf] ss:$0 sm:$0xff] }
 0x8cc   : > { %v890_v0 = vmul.f32 %v888_v12, %v2614_v10 }
 0x8ce   : > { %v892_v1 = vsub.f32 %v882_v4, %v890_v0 }
 0x8d0   : > { %v894_v13 = vmul.f32 %v892_v1, %v892_v1 }
 0x8d2   : > { %v898_v14 = vsel %vm265_vm0, %v894_v13, 0.0  ;;  %v2175_v13 = vld [vmem:[#allocation7 + $0x13] ss:$0 sm:$0xff] }
 0x8d3   : > { %899 = vadd.xlane.f32.xlu1 %v898_v14 }
 0x93e   : > { %v897_v18 = vpop.xlane.xlu0 %896 }
 0x93f   : > { %v901_v19 = vmul.f32 %v897_v18, %v2614_v10 }
 0x941   : > { %v903_v20 = vadd.f32 1e-12, %v901_v19 }
 0x943   : > { %2215 = vrsqrt.f32 %v903_v20  ;;  %vm911_vm2 = vweird.f32 %v903_v20 }
 0x946   : > { %v900_v24 = vpop.xlane.xlu1 %899 }
 0x947   : > { %v902_v28 = vmul.f32 %v900_v24, %v2614_v10 }
 0x949   : > { %v2216_v32 = vpop.eup %2215  ;;  %v904_v33 = vadd.f32 1e-12, %v902_v28 }
 0x94a   : > { %v906_v34 = vmul.f32 %v2216_v32, %v903_v20  ;;  %vm912_vm1 = vweird.f32 %v2216_v32 }
 0x94b   : > { %2217 = vrsqrt.f32 %v904_v33  ;;  %vm913_vm3 = vmor %vm911_vm2, %vm912_vm1  ;;  %vm921_vm5 = vweird.f32 %v904_v33 }
 0x94c   : > { %v907_v35 = vmul.f32 %v2216_v32, %v906_v34 }
 0x94e   : > { %v908_v36 = vmul.f32 0.5, %v907_v35 }
 0x950   : > { %v909_v37 = vsub.f32 1.5, %v908_v36 }
 0x951   : > { %v2218_v38 = vpop.eup %2217 }
 0x952   : > { %v910_v39 = vmul.f32 %v2216_v32, %v909_v37  ;;  %v916_v40 = vmul.f32 %v2218_v38, %v904_v33  ;;  %vm922_vm4 = vweird.f32 %v2218_v38 }
 0x953   : > { %vm923_vm6 = vmor %vm921_vm5, %vm922_vm4 }
 0x954   : > { %v917_v41 = vmul.f32 %v2218_v38, %v916_v40  ;;  %v914_v42 = vsel %vm913_vm3, %v2216_v32, %v910_v39  ;;  %v2177_v32 = vld [vmem:[#allocation7 + $0x14] ss:$0 sm:$0xff] }
 0x955   : > { %v925_v46 = vmul.f32 %v914_v42, %v891_v8  ;;  %v2055_v8 = vld [vmem:[#allocation5 + $0xf8] sm:$0xff] }
 0x956   : > { %v918_v43 = vmul.f32 0.5, %v917_v41 }
 0x957   : > { %v929_v50 = vmul.f32 %v2170_v45, %v925_v46 }
 0x958   : > { %v919_v44 = vsub.f32 1.5, %v918_v43 }
 0x959   : > { %v2682_v53 = vadd.f32 %v2171_v49, %v929_v50 }
 0x95a   : > { %v920_v47 = vmul.f32 %v2218_v38, %v919_v44 }
 0x95c   : > { %v924_v48 = vsel %vm923_vm6, %v2218_v38, %v920_v47 }
 0x95d   : > { %v926_v51 = vmul.f32 %v924_v48, %v892_v1  ;;  %v2054_v1 = vld [vmem:[#allocation5 + $0xf0] sm:$0xff] }
 0x95f   : > { %v930_v52 = vmul.f32 %v2170_v45, %v926_v51 }
 0x961   : > { %v2684_v54 = vadd.f32 %v2171_v49, %v930_v52 }
 0x963   : > { %v939_v55 = vpack.c.bf16 %v2684_v54, %v2682_v53 }
 0x965   : > { %1929 = vmatmul.msk.bf16.vlgmr.msrb.gmra.mxu2 %vm265_vm0, %v939_v55  ;;  %1938 = vmatmul.msk.bf16.vlgmr.msrb.gmra.mxu3 %vm265_vm0, %v939_v55 }
 0x966   : > { %1947 = vmatmul.msk.bf16.vlgmr.msra.gmra.mxu0 %vm265_vm0, %v939_v55 }
 0x975   : > { %1958 = vmatmul.msk.bf16.vlgmr.msra.gmra.mxu3 %vm265_vm0, %v939_v55 }
 0x976   : > { %1967 = vmatmul.msk.bf16.vlgmr.msrb.gmra.mxu0 %vm265_vm0, %v939_v55 }
 0x9e3   : > { %v1030_v57 = vpop.f32.mrf.mxu0 }
 0x9e4   : > { %v1031_v58 = vadd.f32 %v2172_v56, %v1030_v57 }
 0x9e8   : > { %v998_v59 = vpop.f32.mrf.mxu3  ;;  %v966_v60 = vpop.f32.mrf.mxu2 }
 0x9e9   : > { %v999_v4 = vadd.f32 %v2174_v63, %v998_v59  ;;  %v967_v14 = vadd.f32 %v2173_v11, %v966_v60  ;;  %v2176_v59 = vld [vmem:[#allocation7 + $0x12] ss:$0 sm:$0xff] }
 0x9eb   : > { %v1032_v61 = vpop.f32.mrf.mxu0 }
 0x9ec   : > { %v1033_v62 = vadd.f32 %v2172_v56, %v1032_v61 }
 0x9ee   : > { %v1084_v2 = vpack.c.bf16 %v1033_v62, %v1031_v58  ;;  %v2049_v62 = vld [vmem:[#allocation5 + $0x100] sm:$0xff] }
 0x9f0   : > { %1095 = vmatpush.bf16.msra.mxu2 %v1084_v2  ;;  %v1000_v3 = vpop.f32.mrf.mxu3  ;;  %v968_v9 = vpop.f32.mrf.mxu2 }
 0x9f1   : > { %v1001_v5 = vadd.f32 %v2174_v63, %v1000_v3  ;;  %v969_v0 = vadd.f32 %v2173_v11, %v968_v9 }
 0x9f3   : > { %v1036_v6 = vpack.c.bf16 %v1001_v5, %v999_v4  ;;  %v1164_v7 = vpop.f32.mrf.mxu0  ;;  %v1035_v15 = vpack.c.bf16 %v969_v0, %v967_v14 }
 0x9f4   : > { %v1165_v17 = vadd.f32 %v2175_v13, %v1164_v7 }
 0x9f5   : > { %v1041_v12 = vsel %vm427_vm8, %v1036_v6, 0 }
 0x9f6   : > { %1050 = vmatpush.bf16.xpose.msra.mxu1 %v1041_v12 }
 0x9fb   : > { %v1166_v16 = vpop.f32.mrf.mxu0 }
 0x9fc   : > { %v1167_v18 = vadd.f32 %v2175_v13, %v1166_v16 }
 0x9fd   : > { %1948 = vmatmul.msk.bf16.vlgmr.msra.gmra.mxu1 %vm427_vm8, %v1035_v15 }
 0x9fe   : > { %1193 = vmatpush.bf16.msrb.mxu1 %v2055_v8  ;;  %v1202_v19 = vpack.c.bf16 %v1167_v18, %v1165_v17 }
 0xa00   : > { %v1207_v20 = vsel %vm427_vm8, %v1202_v19, 0 }
 0xa01   : > { %1216 = vmatpush.bf16.xpose.msrb.mxu2 %v1207_v20 }
 0xa02   : > { %1194 = vmatpush.bf16.msrb.mxu1 %v2054_v1 }
 0xa06   : > { %1310 = vmatpush.bf16.msra.mxu1 %v2049_v62 }
 0xa0d   : > { %1976 = vmatmul.msk.bf16.vlgmr.msrb.gmra.mxu1 %vm265_vm0, %v939_v55  ;;  %v1132_v55 = vpop.f32.mrf.mxu3 }
 0xa0e   : > { %v1133_v61 = vadd.f32 %v2176_v59, %v1132_v55 }
 0xa15   : > { %v1134_v56 = vpop.f32.mrf.mxu3 }
 0xa16   : > { %v1135_v60 = vadd.f32 %v2176_v59, %v1134_v56 }
 0xa18   : > { %v1201_v58 = vpack.c.bf16 %v1135_v60, %v1133_v61  ;;  %v2057_v60 = vld [vmem:[#allocation5 + $0x110] sm:$0xff] }
 0xa7a   : > { %v1052_v21 = vpop.f32.mrf.mxu1 }
 0xa7b   : > { %v1057_v22 = vmul.f32 0.25, %v1052_v21 }
 0xa7d   : > { %v1059_v23 = vadd.f32 %v1057_v22, %v2641_v25 }
 0xa7f   : > { %v1061_v24 = vsel %vm427_vm8, %v1059_v23, -inf }
 0xa80   : > { %1062 = vmax.xlane.f32.xlu2 %v1061_v24 }
 0xa82   : > { %v1054_v26 = vpop.f32.mrf.mxu1 }
 0xa83   : > { %v1058_v27 = vmul.f32 0.25, %v1054_v26 }
 0xa85   : > { %v1060_v28 = vadd.f32 %v1058_v27, %v2645_v31  ;;  %v2056_v27 = vld [vmem:[#allocation5 + $0x108] sm:$0xff] }
 0xa86   : > { %1287 = vmatpush.bf16.msra.mxu0 %v2056_v27 }
 0xa87   : > { %v1064_v29 = vsel %vm427_vm8, %v1060_v28, -inf }
 0xa88   : > { %1065 = vmax.xlane.f32.xlu0 %v1064_v29 }
 0xa8a   : > { %v1196_v30 = vpop.f32.mrf.mxu1 }
 0xa8b   : > { %v1197_v34 = vadd.f32 %v2177_v32, %v1196_v30 }
 0xa92   : > { %v1198_v33 = vpop.f32.mrf.mxu1 }
 0xa93   : > { %v1199_v35 = vadd.f32 %v2177_v32, %v1198_v33  ;;  %v2178_v33 = vld [vmem:[#allocation7 + $0x15] ss:$0 sm:$0xff] }
 0xa95   : > { %v1250_v36 = vpack.c.bf16 %v1199_v35, %v1197_v34 }
 0xa97   : > { %1261 = vmatpush.bf16.msrb.mxu3 %v1250_v36 }
 0xaf3   : > { %v1063_v37 = vpop.xlane.xlu2 %1062 }
 0xaf4   : > { %v1067_v38 = vsub.f32 %v1059_v23, %v1063_v37 }
 0xaf6   : > { %v1069_v39 = vmul.f32 1.442695, %v1067_v38 }
 0xaf8   : > { %2219 = vpow2.f32 %v1069_v39 }
 0xafb   : > { %v1066_v40 = vpop.xlane.xlu0 %1065 }
 0xafc   : > { %v1068_v41 = vsub.f32 %v1060_v28, %v1066_v40 }
 0xafe   : > { %v2220_v42 = vpop.eup %2219  ;;  %v1071_v43 = vmul.f32 1.442695, %v1068_v41 }
 0xaff   : > { %v1073_v44 = vsel %vm427_vm8, %v2220_v42, 0.0 }
 0xb00   : > { %2221 = vpow2.f32 %v1071_v43  ;;  %1074 = vadd.xlane.f32.xlu1 %v1073_v44 }
 0xb06   : > { %v2222_v45 = vpop.eup %2221 }
 0xb07   : > { %v1076_v46 = vsel %vm427_vm8, %v2222_v45, 0.0 }
 0xb08   : > { %1077 = vadd.xlane.f32.xlu2 %v1076_v46 }
 0xb73   : > { %v1075_v47 = vpop.xlane.xlu1 %1074 }
 0xb74   : > { %2223 = vrcp.f32 %v1075_v47 }
 0xb7a   : > { %v2224_v49 = vpop.eup %2223 }
 0xb7b   : > { %v1078_v48 = vpop.xlane.xlu2 %1077  ;;  %v1081_v51 = vmul.f32 %v2224_v49, %v2220_v42 }
 0xb7c   : > { %2225 = vrcp.f32 %v1078_v48 }
 0xb82   : > { %v2226_v50 = vpop.eup %2225 }
 0xb83   : > { %v1082_v52 = vmul.f32 %v2226_v50, %v2222_v45 }
 0xb85   : > { %v1083_v57 = vpack.c.bf16 %v1082_v52, %v1081_v51 }
 0xb87   : > { %1949 = vmatmul.msk.bf16.vlgmr.msra.gmra.mxu2 %vm427_vm8, %v1083_v57 }
 0xb97   : > { %1977 = vmatmul.msk.bf16.vlgmr.msrb.gmra.mxu2 %vm427_vm8, %v1201_v58 }
 0xc0a   : > { %v1097_v63 = vpop.f32.mrf.mxu2 }
 0xc12   : > { %v1099_v2 = vpop.f32.mrf.mxu2 }
 0xc13   : > { %v1104_v3 = vpack.c.bf16 %v1099_v2, %v1097_v63 }
 0xc15   : > { %1988 = vmatmul.msk.bf16.vlgmr.msra.gmra.mxu1 %vm427_vm8, %v1104_v3 }
 0xc1a   : > { %v1218_v4 = vpop.f32.mrf.mxu2 }
 0xc1b   : > { %v1223_v5 = vmul.f32 0.25, %v1218_v4 }
 0xc1d   : > { %v1225_v6 = vadd.f32 %v1223_v5, %v2641_v25 }
 0xc1f   : > { %v1227_v7 = vsel %vm427_vm8, %v1225_v6, -inf }
 0xc20   : > { %1228 = vmax.xlane.f32.xlu0 %v1227_v7 }
 0xc22   : > { %v1220_v8 = vpop.f32.mrf.mxu2 }
 0xc23   : > { %v1224_v9 = vmul.f32 0.25, %v1220_v8 }
 0xc25   : > { %v1226_v11 = vadd.f32 %v1224_v9, %v2645_v31 }
 0xc27   : > { %v1230_v12 = vsel %vm427_vm8, %v1226_v11, -inf }
 0xc28   : > { %1231 = vmax.xlane.f32.xlu1 %v1230_v12 }
 0xc92   : > { %v1312_v32 = vpop.f32.mrf.mxu1 }
 0xc93   : > { %v1229_v0 = vpop.xlane.xlu0 %1228 }
 0xc94   : > { %v1233_v1 = vsub.f32 %v1225_v6, %v1229_v0 }
 0xc96   : > { %v1235_v13 = vmul.f32 1.442695, %v1233_v1  ;;  %v2179_v1 = vld [vmem:[#allocation7 + $0x16] ss:$0 sm:$0xff] }
 0xc98   : > { %2227 = vpow2.f32 %v1235_v13 }
 0xc9a   : > { %v1314_v39 = vpop.f32.mrf.mxu1 }
 0xc9b   : > { %v1232_v14 = vpop.xlane.xlu1 %1231 }
 0xc9c   : > { %v1234_v15 = vsub.f32 %v1226_v11, %v1232_v14 }
 0xc9e   : > { %v2228_v16 = vpop.eup %2227  ;;  %v1237_v17 = vmul.f32 1.442695, %v1234_v15 }
 0xc9f   : > { %v1239_v25 = vsel %vm427_vm8, %v2228_v16, 0.0 }
 0xca0   : > { %2229 = vpow2.f32 %v1237_v17  ;;  %1240 = vadd.xlane.f32.xlu2 %v1239_v25 }
 0xca6   : > { %v2230_v18 = vpop.eup %2229 }
 0xca7   : > { %v1242_v19 = vsel %vm427_vm8, %v2230_v18, 0.0 }
 0xca8   : > { %1243 = vadd.xlane.f32.xlu0 %v1242_v19 }
 0xd13   : > { %v1241_v31 = vpop.xlane.xlu2 %1240 }
 0xd14   : > { %2231 = vrcp.f32 %v1241_v31 }
 0xd1a   : > { %v2232_v21 = vpop.eup %2231 }
 0xd1b   : > { %v1244_v20 = vpop.xlane.xlu0 %1243  ;;  %v1247_v23 = vmul.f32 %v2232_v21, %v2228_v16  ;;  %v2180_v16 = vld [vmem:[#allocation7 + $0x17] ss:$0 sm:$0xff]  ;;  %v2062_v21 = vld [vmem:[#allocation5 + $0x138] sm:$0xff] }
 0xd1c   : > { %2233 = vrcp.f32 %v1244_v20  ;;  %1471 = vmatpush.bf16.msra.mxu3 %v2062_v21 }
 0xd22   : > { %v2234_v22 = vpop.eup %2233 }
 0xd23   : > { %v1248_v24 = vmul.f32 %v2234_v22, %v2230_v18  ;;  %v2061_v22 = vld [vmem:[#allocation5 + $0x130] sm:$0xff] }
 0xd24   : > { %1472 = vmatpush.bf16.msra.mxu3 %v2061_v22 }
 0xd25   : > { %v1249_v26 = vpack.c.bf16 %v1248_v24, %v1247_v23  ;;  %v2060_v23 = vld [vmem:[#allocation5 + $0x128] sm:$0xff]  ;;  %v2059_v24 = vld [vmem:[#allocation5 + $0x120] sm:$0xff] }
 0xd27   : > { %1978 = vmatmul.msk.bf16.vlgmr.msrb.gmra.mxu3 %vm427_vm8, %v1249_v26  ;;  %v2181_v26 = vld [vmem:[#allocation7 + $0x18] ss:$0 sm:$0xff] }
 0xd28   : > { %1473 = vmatpush.bf16.msra.mxu3 %v2060_v23 }
 0xd2c   : > { %1474 = vmatpush.bf16.msra.mxu3 %v2059_v24 }
 0xdaa   : > { %v1263_v28 = vpop.f32.mrf.mxu3 }
 0xdb2   : > { %v1265_v29 = vpop.f32.mrf.mxu3 }
 0xdb3   : > { %v1270_v30 = vpack.c.bf16 %v1265_v29, %v1263_v28 }
 0xdb5   : > { %1983 = vmatmul.msk.bf16.vlgmr.msra.gmra.mxu0 %vm427_vm8, %v1270_v30 }
 0xe32   : > { %v1289_v34 = vpop.f32.mrf.mxu0 }
 0xe33   : > { %v1313_v35 = vadd.f32 %v1312_v32, %v1289_v34 }
 0xe35   : > { %v1319_v36 = vadd.f32 %v2178_v33, %v1313_v35 }
 0xe37   : > { %v1321_v37 = vadd.f32 %v1319_v36, %v2682_v53 }
 0xe39   : > { %v1323_v38 = vsel %vm265_vm0, %v1321_v37, 0.0 }
 0xe3a   : > { %v1291_v40 = vpop.f32.mrf.mxu0  ;;  %1324 = vadd.xlane.f32.xlu1 %v1323_v38 }
 0xe3b   : > { %v1315_v41 = vadd.f32 %v1314_v39, %v1291_v40 }
 0xe3d   : > { %v1320_v42 = vadd.f32 %v2178_v33, %v1315_v41 }
 0xe3f   : > { %v1322_v43 = vadd.f32 %v1320_v42, %v2684_v54  ;;  %v2058_v54 = vld [vmem:[#allocation5 + $0x118] sm:$0xff] }
 0xe40   : > { %1403 = vmatpush.bf16.msra.mxu2 %v2058_v54 }
 0xe41   : > { %v1326_v44 = vsel %vm265_vm0, %v1322_v43, 0.0 }
 0xe42   : > { %1327 = vadd.xlane.f32.xlu2 %v1326_v44 }
 0xe44   : > { %1404 = vmatpush.bf16.msra.mxu2 %v2057_v60 }
 0xead   : > { %v1325_v45 = vpop.xlane.xlu1 %1324 }
 0xeae   : > { %v1329_v46 = vmul.f32 %v1325_v45, %v2614_v10 }
 0xeb0   : > { %v1331_v47 = vsub.f32 %v1321_v37, %v1329_v46 }
 0xeb2   : > { %v1333_v48 = vmul.f32 %v1331_v47, %v1331_v47 }
 0xeb4   : > { %v1335_v49 = vsel %vm265_vm0, %v1333_v48, 0.0 }
 0xeb5   : > { %v1328_v53 = vpop.xlane.xlu2 %1327  ;;  %1336 = vadd.xlane.f32.xlu0 %v1335_v49 }
 0xeb6   : > { %v1330_v50 = vmul.f32 %v1328_v53, %v2614_v10 }
 0xeb8   : > { %v1332_v51 = vsub.f32 %v1322_v43, %v1330_v50  ;;  %v2182_v50 = vld [vmem:[#allocation7 + $0x19] ss:$0 sm:$0xff] }
 0xeba   : > { %v1334_v52 = vmul.f32 %v1332_v51, %v1332_v51 }
 0xebc   : > { %v1338_v55 = vsel %vm265_vm0, %v1334_v52, 0.0 }
 0xebd   : > { %1339 = vadd.xlane.f32.xlu1 %v1338_v55 }
 0xf28   : > { %v1337_v57 = vpop.xlane.xlu0 %1336 }
 0xf29   : > { %v1341_v56 = vmul.f32 %v1337_v57, %v2614_v10 }
 0xf2b   : > { %v1343_v59 = vadd.f32 1e-12, %v1341_v56 }
 0xf2d   : > { %2235 = vrsqrt.f32 %v1343_v59  ;;  %vm1351_vm8 = vweird.f32 %v1343_v59 }
 0xf30   : > { %v1340_v61 = vpop.xlane.xlu1 %1339 }
 0xf31   : > { %v1342_v58 = vmul.f32 %v1340_v61, %v2614_v10  ;;  %v2729_v61 = vld [vmem:[%s2594_s14] sm:$0xff] }
 0xf33   : > { %v2236_v62 = vpop.eup %2235  ;;  %v1344_v63 = vadd.f32 1e-12, %v1342_v58  ;;  %v2733_v58 = vld [vmem:[%s2594_s14 + $0x8] sm:$0xff]  ;;  %s2363_s14 = scalar_lea.hbm %s2832_s3, 32 }
 0xf34   : > { %v1346_v2 = vmul.f32 %v2236_v62, %v1343_v59  ;;  %vm1352_vm7 = vweird.f32 %v2236_v62  ;;  %p2365_p9 = scmp.lt.s32.totalorder %s2363_s14, %s2359_s30 }
 0xf35   : > { %2237 = vrsqrt.f32 %v1344_v63  ;;  %vm1353_vm9 = vmor %vm1351_vm8, %vm1352_vm7  ;;  %vm1361_vm11 = vweird.f32 %v1344_v63 }
 0xf36   : > { %v1347_v3 = vmul.f32 %v2236_v62, %v1346_v2  ;;  %p2366_p2 = por %p2365_p9, %p2364_p11 }
 0xf38   : > { %v1348_v4 = vmul.f32 0.5, %v1347_v3  ;;  %p2367_p10 = pnand %p2366_p2, %p2362_p8 }
 0xf3a   : > { %v1349_v5 = vsub.f32 1.5, %v1348_v4 }
 0xf3b   : > { %v2238_v6 = vpop.eup %2237 }
 0xf3c   : > { %v1350_v7 = vmul.f32 %v2236_v62, %v1349_v5  ;;  %v1356_v8 = vmul.f32 %v2238_v6, %v1344_v63  ;;  %vm1362_vm10 = vweird.f32 %v2238_v6 }
 0xf3d   : > { %vm1363_vm12 = vmor %vm1361_vm11, %vm1362_vm10 }
 0xf3e   : > { %v1357_v9 = vmul.f32 %v2238_v6, %v1356_v8  ;;  %v1354_v11 = vsel %vm1353_vm9, %v2236_v62, %v1350_v7 }
 0xf3f   : > { %v1365_v13 = vmul.f32 %v1354_v11, %v1331_v47 }
 0xf40   : > { %v1358_v12 = vmul.f32 0.5, %v1357_v9 }
 0xf41   : > { %v1369_v17 = vmul.f32 %v2179_v1, %v1365_v13 }
 0xf42   : > { %v1359_v0 = vsub.f32 1.5, %v1358_v12 }
 0xf43   : > { %v1373_v19 = vadd.f32 %v2180_v16, %v1369_v17 }
 0xf44   : > { %v1360_v14 = vmul.f32 %v2238_v6, %v1359_v0 }
 0xf46   : > { %v1364_v15 = vsel %vm1363_vm12, %v2238_v6, %v1360_v14 }
 0xf47   : > { %v1366_v25 = vmul.f32 %v1364_v15, %v1332_v51  ;;  %v2457_v15 = vmov 48  }
 0xf48   : > { %2153 = vset.pattern.permute.xlu0 %v2457_v15  ;;  %2152 = vset.pattern.permute.xlu1 %v2457_v15 }
 0xf49   : > { %v1370_v18 = vmul.f32 %v2179_v1, %v1366_v25 }
 0xf4b   : > { %v1374_v31 = vadd.f32 %v2180_v16, %v1370_v18 }
 0xf4d   : > { %v1379_v20 = vpack.c.bf16 %v1374_v31, %v1373_v19 }
 0xf4f   : > { %1997 = vmatmul.msk.bf16.vlgmr.msra.gmra.mxu2 %vm265_vm0, %v1379_v20 }
 0xfd2   : > { %v1406_v27 = vpop.f32.mrf.mxu2 }
 0xfd3   : > { %v1407_v28 = vadd.f32 %v2181_v26, %v1406_v27 }
 0xfd5   : > { %v1413_v29 = vmul.f32 0.044715, %v1407_v28  ;;  %v1411_v45 = vmul.f32 0.5, %v1407_v28 }
 0xfd7   : > { %v1415_v30 = vmul.f32 %v1413_v29, %v1407_v28 }
 0xfd9   : > { %v1417_v32 = vmul.f32 %v1415_v30, %v1407_v28 }
 0xfda   : > { %v1408_v33 = vpop.f32.mrf.mxu2 }
 0xfdb   : > { %v1419_v34 = vadd.f32 %v1417_v32, %v1407_v28  ;;  %v1409_v35 = vadd.f32 %v2181_v26, %v1408_v33  ;;  %v2183_v28 = vld [vmem:[#allocation7 + $0x1a] ss:$0 sm:$0xff]  ;;  %v2458_v32 = vmov 49  }
 0xfdc   : > { %2154 = vset.pattern.permute.xlu2 %v2458_v32 }
 0xfdd   : > { %v1414_v36 = vmul.f32 0.044715, %v1409_v35  ;;  %v1421_v37 = vmul.f32 0.7978846, %v1419_v34  ;;  %v1412_v46 = vmul.f32 0.5, %v1409_v35 }
 0xfde   : > { %v2184_v34 = vld [vmem:[#allocation7 + $0x1b] ss:$0 sm:$0xff] }
 0xfdf   : > { %v1416_v38 = vmul.f32 %v1414_v36, %v1409_v35  ;;  %2239 = vtanh.f32 %v1421_v37 }
 0xfe1   : > { %v1418_v39 = vmul.f32 %v1416_v38, %v1409_v35 }
 0xfe3   : > { %v1420_v40 = vadd.f32 %v1418_v39, %v1409_v35 }
 0xfe5   : > { %v1422_v41 = vmul.f32 0.7978846, %v1420_v40  ;;  %v2240_v42 = vpop.eup %2239 }
 0xfe6   : > { %v1425_v43 = vadd.f32 1.0, %v2240_v42 }
 0xfe7   : > { %2241 = vtanh.f32 %v1422_v41 }
 0xfe8   : > { %v1427_v48 = vmul.f32 %v1425_v43, %v1411_v45 }
 0xfed   : > { %v2242_v44 = vpop.eup %2241 }
 0xfee   : > { %v1426_v47 = vadd.f32 1.0, %v2242_v44 }
 0xff0   : > { %v1428_v49 = vmul.f32 %v1426_v47, %v1412_v46 }
 0xff2   : > { %v1437_v53 = vpack.c.bf16 %v1428_v49, %v1427_v48 }
 0xff4   : > { %2014 = vmatmul.msk.bf16.vlgmr.msra.gmra.mxu3 %vm863_vm15, %v1437_v53 }
0x1077   : > { %v1476_v51 = vpop.f32.mrf.mxu3 }
0x1078   : > { %v1477_v52 = vadd.f32 %v2182_v50, %v1476_v51 }
0x107a   : > { %v1481_v55 = vadd.f32 %v1477_v52, %v1373_v19 }
0x107c   : > { %v1483_v54 = vsel %vm265_vm0, %v1481_v55, 0.0 }
0x107d   : > { %1484 = vadd.xlane.f32.xlu2 %v1483_v54 }
0x107f   : > { %v1478_v57 = vpop.f32.mrf.mxu3 }
0x1080   : > { %v1479_v56 = vadd.f32 %v2182_v50, %v1478_v57 }
0x1082   : > { %v1482_v59 = vadd.f32 %v1479_v56, %v1374_v31 }
0x1084   : > { %v1486_v60 = vsel %vm265_vm0, %v1482_v59, 0.0 }
0x1085   : > { %1487 = vadd.xlane.f32.xlu0 %v1486_v60 }
0x1099   : > { %1537 = vrot.lane.b32.xlu0 %v2729_v61, %s2455_s26 }
0x10a1   : > { %1558 = vrot.lane.b32.xlu0 %v2733_v58, %s2456_s10 }
0x10f0   : > { %v1485_v62 = vpop.xlane.xlu2 %1484 }
0x10f1   : > { %v1489_v63 = vmul.f32 %v1485_v62, %v2614_v10 }
0x10f3   : > { %v1491_v2 = vsub.f32 %v1481_v55, %v1489_v63 }
0x10f5   : > { %v1493_v3 = vmul.f32 %v1491_v2, %v1491_v2 }
0x10f7   : > { %v1495_v4 = vsel %vm265_vm0, %v1493_v3, 0.0 }
0x10f8   : > { %v1488_v5 = vpop.xlane.xlu0 %1487  ;;  %1496 = vadd.xlane.f32.xlu1 %v1495_v4 }
0x10f9   : > { %v1490_v6 = vmul.f32 %v1488_v5, %v2614_v10 }
0x10fb   : > { %v1492_v7 = vsub.f32 %v1482_v59, %v1490_v6 }
0x10fd   : > { %v1494_v8 = vmul.f32 %v1492_v7, %v1492_v7 }
0x10ff   : > { %v1498_v9 = vsel %vm265_vm0, %v1494_v8, 0.0 }
0x1100   : > { %1499 = vadd.xlane.f32.xlu2 %v1498_v9 }
0x110b   : > { %v1538_v0 = vpop.permute.xlu0 %1537 }
0x110c   : > { %v1544_v38 = vsel %vm1543_vm13, %v1538_v0, 0.0 }
0x1111   : > { %1539 = vrot.lane.b32.xlu1 %v2733_v58, %s2455_s26 }
0x1113   : > { %v1559_v18 = vpop.permute.xlu0 %1558 }
0x1114   : > { %v1563_v31 = vsel %vm1543_vm13, %v1559_v18, 0.0 }
0x1118   : > { %1556 = vrot.lane.b32.xlu2 %v2729_v61, %s2456_s10 }
0x116b   : > { %v1497_v11 = vpop.xlane.xlu1 %1496 }
0x116c   : > { %v1501_v12 = vmul.f32 %v1497_v11, %v2614_v10 }
0x116e   : > { %v1503_v1 = vadd.f32 1e-12, %v1501_v12 }
0x1170   : > { %2243 = vrsqrt.f32 %v1503_v1  ;;  %vm1511_vm15 = vweird.f32 %v1503_v1 }
0x1173   : > { %v1500_v13 = vpop.xlane.xlu2 %1499 }
0x1174   : > { %v1502_v14 = vmul.f32 %v1500_v13, %v2614_v10 }
0x1176   : > { %v2244_v16 = vpop.eup %2243  ;;  %v1504_v17 = vadd.f32 1e-12, %v1502_v14 }
0x1177   : > { %v1506_v25 = vmul.f32 %v2244_v16, %v1503_v1  ;;  %vm1512_vm14 = vweird.f32 %v2244_v16 }
0x1178   : > { %2245 = vrsqrt.f32 %v1504_v17  ;;  %vm1513_vm1 = vmor %vm1511_vm15, %vm1512_vm14  ;;  %vm1521_vm3 = vweird.f32 %v1504_v17 }
0x1179   : > { %v1507_v19 = vmul.f32 %v2244_v16, %v1506_v25 }
0x117b   : > { %v1508_v20 = vmul.f32 0.5, %v1507_v19  ;;  %v1557_v21 = vpop.permute.xlu2 %1556 }
0x117c   : > { %v1562_v22 = vsel %vm1543_vm13, %v1557_v21, 0.0 }
0x117d   : > { %v1509_v23 = vsub.f32 1.5, %v1508_v20  ;;  %v1564_v24 = vadd.f32 %v1563_v31, %v1562_v22 }
0x117e   : > { %v2246_v10 = vpop.eup %2245 }
0x117f   : > { %v1510_v26 = vmul.f32 %v2244_v16, %v1509_v23  ;;  %v1516_v27 = vmul.f32 %v2246_v10, %v1504_v17  ;;  %1565 = vadd.xlane.f32.xlu2 %v1564_v24  ;;  %vm1522_vm2 = vweird.f32 %v2246_v10 }
0x1180   : > { %vm1523_vm4 = vmor %vm1521_vm3, %vm1522_vm2 }
0x1181   : > { %v1514_v29 = vsel %vm1513_vm1, %v2244_v16, %v1510_v26  ;;  %v1517_v30 = vmul.f32 %v2246_v10, %v1516_v27 }
0x1182   : > { %v1525_v33 = vmul.f32 %v1514_v29, %v1491_v2 }
0x1183   : > { %v1518_v35 = vmul.f32 0.5, %v1517_v30  ;;  %v1540_v36 = vpop.permute.xlu1 %1539 }
0x1184   : > { %v1529_v37 = vmul.f32 %v2183_v28, %v1525_v33  ;;  %v1545_v39 = vsel %vm1543_vm13, %v1540_v36, 0.0 }
0x1185   : > { %v1519_v40 = vsub.f32 1.5, %v1518_v35  ;;  %v1546_v41 = vadd.f32 %v1545_v39, %v1544_v38 }
0x1186   : > { %v2748_v42 = vadd.f32 %v2184_v34, %v1529_v37 }
0x1187   : > { %v1520_v43 = vmul.f32 %v2246_v10, %v1519_v40  ;;  %1547 = vadd.xlane.f32.xlu1 %v1546_v41 }
0x1188   : > { %v1593_v44 = vmul.f32 %v2748_v42, %v2748_v42  ;;  %1535 = vst.msk [vmem:[%s254_s11] sm:$0xff] %vm265_vm0, %v2748_v42 }
0x1189   : > { %v1524_v45 = vsel %vm1523_vm4, %v2246_v10, %v1520_v43 }
0x118a   : > { %v1526_v46 = vmul.f32 %v1524_v45, %v1492_v7  ;;  %v1595_v47 = vsel %vm265_vm0, %v1593_v44, 0.0 }
0x118b   : > { %1596 = vadd.xlane.f32.xlu0 %v1595_v47 }
0x118c   : > { %v1530_v48 = vmul.f32 %v2183_v28, %v1526_v46 }
0x118e   : > { %v2757_v49 = vadd.f32 %v2184_v34, %v1530_v48 }
0x1190   : > { %v1594_v53 = vmul.f32 %v2757_v49, %v2757_v49  ;;  %1536 = vst.msk [vmem:[%s254_s11 + $0x8] sm:$0xff] %vm265_vm0, %v2757_v49 }
0x1192   : > { %v1598_v50 = vsel %vm265_vm0, %v1594_v53, 0.0 }
0x1193   : > { %1599 = vadd.xlane.f32.xlu2 %v1598_v50 }
0x119f   : > { %1579 = vperm.xlu0 %2153, %v2733_v58  }
0x11a0   : > { %1575 = vperm.xlu1 %2152, %v2729_v61  }
0x11a7   : > { %2156 = vset.pattern.permute.xlu0 %v2458_v32 }
0x11a8   : > { %2155 = vset.pattern.permute.xlu1 %v2458_v32 }
0x11a9   : > { %1630 = vperm.xlu1 %2155, %v2733_v58  }
0x11ab   : > { %1626 = vperm.xlu2 %2154, %v2729_v61  }
0x11ac   : > { %2370 = shalt.err (!%p2367_p10)
}
0x11ad   : > { %s2459_s10 = smov 128   ;;  %s2460_s11 = smov 8   ;;  %vm1644_vm11 = vcmask 253952  }
0x11ae   : > { %2078 = dma.vmem_to_hbm [thread:$0]  (%p2558_p5), %s1672_s27, 256, %s1674_s25, %s1654_s28, %s2459_s10, %s2459_s10, %s2460_s11  }
0x11af   : > { %s1826_s6 = sshll.u32 %s2588_s24, 2  ;;  %s2019_s8 = sshll.u32 %s2507_s19, 2 }
0x11b0   : > { %s261_s7 = scalar_lea.vmem [#allocation9], %s1826_s6  ;;  %s1686_s25 = scalar_lea.hbm %s2833_s4, %s2019_s8 }
0x11b1   : > { %s1688_s28 = sshll.u32 %s261_s7, 4  ;;  %s1690_s29 = sshll.u32 %s1686_s25, 4  ;;  %s1689_s28 = int_to_ptr.vmem [resolvable:$true] %s1688_s28  ;;  %s1691_s29 = int_to_ptr.hbm [resolvable:$true] %s1690_s29 }
0x11b2   : > { %s1659_s13 = scalar_lea.sflag [#allocation10], %s2588_s24  ;;  %s2385_s14 = sshra.s32 %s1691_s29, 4  ;;  %s2386_s14 = int_to_ptr.hbm [resolvable:$true] %s2385_s14 }
0x11b3   : > { %s2387_s19 = scalar_lea.hbm %s2386_s14, 4  ;;  %s2391_s10 = scalar_lea.hbm %s2833_s4, 8 }
0x11b4   : > { %p2388_p12 = scmp.ne.s32.totalorder %s2386_s14, %s2387_s19  ;;  %p2392_p3 = scmp.lt.s32.totalorder %s2386_s14, %s2833_s4 }
0x11b5   : > { %p2393_p7 = scmp.lt.s32.totalorder %s2391_s10, %s2387_s19 }
0x11b6   : > { %p2389_p13 = pnand %p2388_p12, %p2558_p5 }
0x11b7   : > { %p2394_p1 = por %p2393_p7, %p2392_p3 }
0x11b8   : > { %p2390_p0 = pneg %p2389_p13 }
0x11ba   : > { %p2395_p4 = pnand %p2394_p1, %p2390_p0 }
0x11f2   : > { %v1566_v51 = vpop.xlane.xlu2 %1565 }
0x11f3   : > { %v1567_v52 = vrot.slane %v1566_v51, 4 }
0x11f5   : > { %v1568_v55 = vadd.f32 %v1567_v52, %v1566_v51 }
0x11f7   : > { %v1569_v57 = vrot.slane %v1568_v55, 2 }
0x11f9   : > { %v1570_v61 = vadd.f32 %v1569_v57, %v1568_v55 }
0x11fa   : > { %v1548_v54 = vpop.xlane.xlu1 %1547 }
0x11fb   : > { %v1549_v56 = vrot.slane %v1548_v54, 4  ;;  %v1571_v2 = vrot.slane %v1570_v61, 1 }
0x11fd   : > { %v1550_v59 = vadd.f32 %v1549_v56, %v1548_v54  ;;  %v1572_v6 = vadd.f32 %v1571_v2, %v1570_v61 }
0x11fe   : > { %v1597_v60 = vpop.xlane.xlu0 %1596 }
0x11ff   : > { %v1551_v58 = vrot.slane %v1550_v59, 2  ;;  %v1601_v62 = vmax.f32 %v1597_v60, 1e-16 }
0x1201   : > { %2247 = vrsqrt.f32 %v1601_v62  ;;  %v1552_v63 = vadd.f32 %v1551_v58, %v1550_v59  ;;  %vm1609_vm6 = vweird.f32 %v1601_v62 }
0x1203   : > { %v1553_v3 = vrot.slane %v1552_v63, 1 }
0x1205   : > { %v1554_v4 = vadd.f32 %v1553_v3, %v1552_v63 }
0x1206   : > { %v1600_v5 = vpop.xlane.xlu2 %1599 }
0x1207   : > { %v2248_v7 = vpop.eup %2247  ;;  %v1602_v8 = vmax.f32 %v1600_v5, 1e-16  ;;  %2064 = vpush %v1554_v4 }
0x1208   : > { %v1604_v9 = vmul.f32 %v2248_v7, %v1601_v62  ;;  %2066 = vpush %v1572_v6  ;;  %vm1610_vm5 = vweird.f32 %v2248_v7 }
0x1209   : > { %2249 = vrsqrt.f32 %v1602_v8  ;;  %vm1611_vm7 = vmor %vm1609_vm6, %vm1610_vm5  ;;  %vm1619_vm9 = vweird.f32 %v1602_v8 }
0x120a   : > { %v1605_v11 = vmul.f32 %v2248_v7, %v1604_v9 }
0x120c   : > { %v1606_v12 = vmul.f32 0.5, %v1605_v11 }
0x120e   : > { %v1607_v0 = vsub.f32 1.5, %v1606_v12  ;;  %v1627_v26 = vpop.permute.xlu2 %1626 }
0x120f   : > { %v2250_v1 = vpop.eup %2249 }
0x1210   : > { %v1614_v13 = vmul.f32 %v2250_v1, %v1602_v8  ;;  %v1608_v14 = vmul.f32 %v2248_v7, %v1607_v0  ;;  %vm1620_vm8 = vweird.f32 %v2250_v1 }
0x1211   : > { %v1580_v15 = vpop.permute.xlu0 %1579  ;;  %vm1621_vm10 = vmor %vm1619_vm9, %vm1620_vm8 }
0x1212   : > { %v1615_v16 = vmul.f32 %v2250_v1, %v1614_v13  ;;  %v1583_v17 = vmul.f32 %v1580_v15, %v2757_v49  ;;  %v1576_v25 = vpop.permute.xlu1 %1575  ;;  %v1612_v20 = vsel %vm1611_vm7, %v2248_v7, %v1608_v14 }
0x1213   : > { %v1582_v18 = vmul.f32 %v1576_v25, %v2748_v42  ;;  %v1623_v24 = vmul.f32 %v1612_v20, %v2748_v42 }
0x1214   : > { %v1616_v19 = vmul.f32 0.5, %v1615_v16  ;;  %v1585_v31 = vsel %vm265_vm0, %v1583_v17, 0.0 }
0x1215   : > { %v1584_v21 = vsel %vm265_vm0, %v1582_v18, 0.0  ;;  %v1633_v30 = vmul.f32 %v1627_v26, %v1623_v24 }
0x1216   : > { %v1617_v22 = vsub.f32 1.5, %v1616_v19  ;;  %v1586_v23 = vadd.f32 %v1585_v31, %v1584_v21 }
0x1217   : > { %v1635_v37 = vsel %vm265_vm0, %v1633_v30, 0.0 }
0x1218   : > { %v1587_v10 = vrot.slane %v1586_v23, 4  ;;  %v1618_v27 = vmul.f32 %v2250_v1, %v1617_v22 }
0x121a   : > { %v1588_v28 = vadd.f32 %v1587_v10, %v1586_v23  ;;  %v1622_v29 = vsel %vm1621_vm10, %v2250_v1, %v1618_v27 }
0x121b   : > { %v1631_v32 = vpop.permute.xlu1 %1630  ;;  %v1624_v33 = vmul.f32 %v1622_v29, %v2757_v49 }
0x121c   : > { %v1589_v34 = vrot.slane %v1588_v28, 2 }
0x121d   : > { %v1634_v35 = vmul.f32 %v1631_v32, %v1624_v33 }
0x121e   : > { %v1590_v36 = vadd.f32 %v1589_v34, %v1588_v28 }
0x121f   : > { %v1636_v38 = vsel %vm265_vm0, %v1634_v35, 0.0 }
0x1220   : > { %v1591_v39 = vrot.slane %v1590_v36, 1  ;;  %v1637_v40 = vadd.f32 %v1636_v38, %v1635_v37 }
0x1222   : > { %v1592_v41 = vadd.f32 %v1591_v39, %v1590_v36  ;;  %v1638_v42 = vrot.slane %v1637_v40, 4 }
0x1224   : > { %v1639_v43 = vadd.f32 %v1638_v42, %v1637_v40  ;;  %1645 = vst.msk [vmem:[%s261_s7] sm:$0x1] %vm1644_vm11, %v1592_v41 }
0x1226   : > { %v1640_v44 = vrot.slane %v1639_v43, 2 }
0x1228   : > { %v1641_v45 = vadd.f32 %v1640_v44, %v1639_v43 }
0x122a   : > { %v1642_v46 = vrot.slane %v1641_v45, 1 }
0x122c   : > { %v1643_v47 = vadd.f32 %v1642_v46, %v1641_v45 }
0x122e   : > { %1646 = vst.msk [vmem:[%s261_s7 + $0x1] sm:$0x1] %vm1644_vm11, %v1643_v47 }
0x1238   : > { %s2065_s30 = spop %2064 }
0x1239   : > { %v1647_v48 = vstv %s2065_s30  ;;  %s2067_s5 = spop %2066 }
0x123a   : > { %1649 = vst.msk [vmem:[%s261_s7 + $0x2] sm:$0x1] %vm1644_vm11, %v1647_v48  ;;  %v1650_v49 = vstv %s2067_s5 }
0x123b   : > { %1652 = vst.msk [vmem:[%s261_s7 + $0x3] sm:$0x1] %vm1644_vm11, %v1650_v49 }
0x123c   : > { %2398 = shalt.err (!%p2395_p4)
}
0x123d   : > { %2079 = dma.vmem_to_hbm [thread:$0]  (%p2558_p5), %s1689_s28, 64, %s1691_s29, %s1659_s13  }
0x123e PF: > { %s1702_s24 = sand.u32 1, %s2433_s15   ;;  %p2839_p8 = scmp.ge.s32.totalorder %s2445_s18, 2 }
0x123f   : > { %s1703_s7 = scalar_lea.sflag [#allocation4], %s1702_s24 }
0x1240   : > { %p2094_p11 = pnand %p2839_p8, %p2521_p6 }
0x1242   : > { %p2095_p9 = pneg %p2094_p11 }
0x1244   : > { %2424 = dma.done.wait (%p2095_p9), %s1703_s7, 256  }
0x1245   : > { %2426 = vsyncadd (%p2095_p9), %s1703_s7, 4294967040  ;;  %s1713_s8 = scalar_lea.sflag [#allocation10], %s1702_s24 }
0x1246   : > { %2428 = dma.done.wait (%p2095_p9), %s1713_s8, 64  }
0x1247   : > { %2430 = vsyncadd (%p2095_p9), %s1713_s8, 4294967232  ;;  %p22_p5 = scmp.ge.s32.totalorder %s2545_s12, 4   ;;  %s2840_s15 = smov %s2437_s16 }
0x1248   : > { %s2841_s16 = smov %s2441_s17  ;;  %s2842_s17 = smov %s2554_s20 }
0x1249   : > { %s2843_s18 = smov %s2545_s12  ;;  %24 = sbr.rel (!%p22_p5) target bundleno = 8 (0x8), region = 102 }
0x124e   :  { %1719 = vsyncpa [#allocation3], 1 }
0x124f   :  { %1721 = vsyncpa [#allocation3 + $0x1], 1 }
0x1250   :  { %1722 = vsyncpa [#allocation6], 1 }
0x1251   :  { %1723 = vsyncpa [#allocation4], 1 }
0x1252   :  { %1725 = vsyncpa [#allocation4 + $0x1], 1 }
0x1253   :  { %1726 = vsyncpa [#allocation10], 1 }
0x1254   :  { %1728 = vsyncpa [#allocation10 + $0x1], 1 }

</bundles_post_ra>
